<compile_context>
chip_gen: v7x
topology: tpu7x:2x2x1
jax: 0.10.0
libtpu: 0.0.40
codegen_flags: <defaults>
</compile_context>

<pallas_src>
import jax
import jax.numpy as jnp
from jax.experimental import pallas as pl
from jax.experimental.pallas import tpu as pltpu


def _round_up(n, m):
    return ((n + m - 1) // m) * m


def _pad_to(a, shape):
    pads = [(0, s - d) for d, s in zip(a.shape, shape)]
    return jnp.pad(a, pads)


def _tensorcores_per_chip():
    """Best-effort: 2 TensorCores per chip on v7x, 1 on v5e/v6e. Never raises."""
    try:
        kind = jax.devices()[0].device_kind.lower()
        return 2 if "v7" in kind else 1
    except Exception:
        return 1


# ---------------------------------------------------------------------------
# Kernel
# ---------------------------------------------------------------------------
def _dnn_ordinal_kernel(x_ref,
                        w1_ref, b1_ref,
                        w2_ref, b2_ref,
                        w3_ref, b3_ref,
                        w4c_ref, b4c_ref,
                        out_ref):
    """Fused 4-layer MLP (+ folded CORAL bias) for one batch tile.

    Matmul operands are bf16 (MXU native); accumulation, bias add and ReLU in f32.
    ReLU is fused with the bf16 downcast so inter-layer activations stay bf16.
    """
    # Per-tile cast: x lives in HBM as f32, no wrapper-side copy.
    x = x_ref[...].astype(jnp.bfloat16)                                 # (tm, F)

    # fclayer1: Linear -> Dropout(identity, eval) -> ReLU
    # TODO(synk): Dropout(0.25) is stochastic in train mode; eval-mode identity here.
    z = jnp.dot(x, w1_ref[...], preferred_element_type=jnp.float32) + b1_ref[...]
    z = jnp.maximum(z, 0.0).astype(jnp.bfloat16)

    # fclayer2: Linear -> ReLU
    z = jnp.dot(z, w2_ref[...], preferred_element_type=jnp.float32) + b2_ref[...]
    z = jnp.maximum(z, 0.0).astype(jnp.bfloat16)

    # fclayer3: Linear -> ReLU
    z = jnp.dot(z, w3_ref[...], preferred_element_type=jnp.float32) + b3_ref[...]
    z = jnp.maximum(z, 0.0).astype(jnp.bfloat16)

    # fclayer4 + CORAL, folded: out[:, c] = z @ w4[:, 0] + b4 + coral[c]
    out = jnp.dot(z, w4c_ref[...], preferred_element_type=jnp.float32) + b4c_ref[...]
    out_ref[...] = out.astype(out_ref.dtype)        # bf16 writeback (lane-dense 128)


# ---------------------------------------------------------------------------
# One-time parameter preparation (hoisted out of the forward)
# ---------------------------------------------------------------------------
def prepare_params(params, num_classes):
    """Pad hidden dims to multiples of 128, cast weights to bf16, fold layer4+CORAL.

    Call once; reuse the result for every forward (removes ~8 small XLA pad/convert
    launches and their HBM round-trips from each inference step). Zero padding keeps
    the math exact: padded weight/bias columns are zero -> ReLU(0)=0 -> no effect.
    """
    (w1, b1), (w2, b2), (w3, b3), (w4, b4), coral = params
    if w4.shape[1] != 1 or b4.reshape(-1).shape[0] != 1:
        raise ValueError("final Linear must map to a single output (CORAL head)")

    in_features = w1.shape[0]
    h0, h1, h2 = w1.shape[1], w2.shape[1], w3.shape[1]
    h0p, h1p, h2p = (_round_up(h, 128) for h in (h0, h1, h2))
    cp = _round_up(num_classes, 128)

    return {
        "in_features": in_features,
        "num_classes": num_classes,
        "dims": (h0p, h1p, h2p, cp),
        "w1": _pad_to(w1, (in_features, h0p)).astype(jnp.bfloat16),
        "b1": _pad_to(b1.reshape(1, -1), (1, h0p)).astype(jnp.float32),
        "w2": _pad_to(w2, (h0p, h1p)).astype(jnp.bfloat16),
        "b2": _pad_to(b2.reshape(1, -1), (1, h1p)).astype(jnp.float32),
        "w3": _pad_to(w3, (h1p, h2p)).astype(jnp.bfloat16),
        "b3": _pad_to(b3.reshape(1, -1), (1, h2p)).astype(jnp.float32),
        # Fold layer 4 + CORAL into one lane-dense matmul.
        "w4c": _pad_to(jnp.tile(w4, (1, num_classes)), (h2p, cp)).astype(jnp.bfloat16),
        "b4c": _pad_to(b4.reshape(1, 1) + coral.reshape(1, -1), (1, cp)).astype(jnp.float32),
    }


# ---------------------------------------------------------------------------
# Forward
# ---------------------------------------------------------------------------
def dnn_ordinal_forward(x, prepped, *, tile_m=1024, cores_per_chip=None):
    """Fused DNNordinal forward. Returns [logits, input] like the module (eval mode)."""
    N, F = x.shape
    if F != prepped["in_features"]:
        raise ValueError("feature dim mismatch")
    num_classes = prepped["num_classes"]
    h0p, h1p, h2p, cp = prepped["dims"]

    if cores_per_chip is None:
        cores_per_chip = _tensorcores_per_chip()

    # Batch tile: large (amortizes ~0.35us/grid-step overhead), multiple of 128
    # (MXU/lane friendly, satisfies the (8,128) block rule), clamped to the batch.
    tile_m = max(128, min(_round_up(tile_m, 128), _round_up(N, 128)))
    # Only split a small batch across grid steps on multi-TensorCore chips (v7x);
    # on single-core chips (v5e/v6e) splitting just adds grid-step overhead.
    if cores_per_chip > 1 and N > 128 and pl.cdiv(N, tile_m) < cores_per_chip:
        tile_m = max(128, _round_up(pl.cdiv(N, cores_per_chip), 128))
    grid_m = pl.cdiv(N, tile_m)   # ragged final block handled by Pallas boundary DMA

    # Advisory cost hint for the XLA scheduler.
    weight_elems = F * h0p + h0p * h1p + h1p * h2p + h2p * cp
    cost = pl.CostEstimate(
        flops=2 * N * weight_elems,
        transcendentals=0,
        bytes_accessed=(N * F * 4                     # x read (f32)
                        + weight_elems * 2            # bf16 weights
                        + (h0p + h1p + h2p + cp) * 4  # f32 biases
                        + N * cp * 2),                # bf16 logits writeback
    )

    full = lambda shape: pl.BlockSpec(shape, lambda i: (0, 0))

    out = pl.pallas_call(
        _dnn_ordinal_kernel,
        out_shape=jax.ShapeDtypeStruct((N, cp), jnp.bfloat16),
        grid_spec=pltpu.PrefetchScalarGridSpec(
            num_scalar_prefetch=0,
            grid=(grid_m,),
            in_specs=[
                pl.BlockSpec((tile_m, F), lambda i: (i, 0)),   # x tile (f32)
                full((F, h0p)),   full((1, h0p)),              # layer 1
                full((h0p, h1p)), full((1, h1p)),              # layer 2
                full((h1p, h2p)), full((1, h2p)),              # layer 3
                full((h2p, cp)),  full((1, cp)),               # layer 4 + coral (folded)
            ],
            out_specs=pl.BlockSpec((tile_m, cp), lambda i: (i, 0)),
        ),
        compiler_params=pltpu.CompilerParams(
            dimension_semantics=("parallel",),
            vmem_limit_bytes=16 * 1024 * 1024,   # honest limit; kernel needs < 5 MiB
        ),
        cost_estimate=cost,
    )(x, prepped["w1"], prepped["b1"], prepped["w2"], prepped["b2"],
      prepped["w3"], prepped["b3"], prepped["w4c"], prepped["b4c"])

    # Trim the lane-padded class dim; upcast the tiny slice back to f32 for the
    # module's interface. Padded batch rows are never materialized (OOB writes drop).
    logits = out[:, :num_classes].astype(jnp.float32)
    return [logits, x]


# ---------------------------------------------------------------------------
# Synthetic params + pure-JAX reference
# ---------------------------------------------------------------------------
def init_params(key, in_channels, num_classes, hidden_dims=None):
    """Deterministic synthetic parameters matching DNNordinal.__init__ shapes."""
    if hidden_dims is None:
        hidden_dims = [200, 100, 50]
    dims = [in_channels] + hidden_dims + [1]
    params = []
    for li, (din, dout) in enumerate(zip(dims[:-1], dims[1:])):
        kw, kb = jax.random.split(jax.random.fold_in(key, li))
        bound = 1.0 / (din ** 0.5)  # PyTorch nn.Linear default init range
        # stored transposed (in, out) relative to PyTorch's (out, in)
        w = jax.random.uniform(kw, (din, dout), jnp.float32, -bound, bound)
        b = jax.random.uniform(kb, (1, dout), jnp.float32, -bound, bound)
        params.append((w, b))
    # coral_bias = arange(num_classes, 0, -1) / num_classes
    coral = (jnp.arange(num_classes, 0, -1, dtype=jnp.float32)
             / num_classes).reshape(1, num_classes)
    return params[0], params[1], params[2], params[3], coral


def reference_forward(x, params, num_classes):
    """Pure-JAX reference with the same bf16-operand / f32-accumulate matmuls.

    (The kernel additionally rounds the stored logits to bf16 -> compare with a
    tolerance of a couple of bf16 ulps.)
    """
    (w1, b1), (w2, b2), (w3, b3), (w4, b4), coral = params
    bf = jnp.bfloat16

    def lin(a, w, b):
        return jnp.dot(a.astype(bf), w.astype(bf),
                       preferred_element_type=jnp.float32) + b

    z = jnp.maximum(lin(x, w1, b1), 0.0)
    z = jnp.maximum(lin(z, w2, b2), 0.0)
    z = jnp.maximum(lin(z, w3, b3), 0.0)
    z = lin(z, w4, b4)          # (N, 1)
    return z + coral            # (N, C)


if __name__ == "__main__":
    key = jax.random.PRNGKey(0)
    in_channels = 32
    num_classes = 7
    N = 200   # deliberately not a multiple of the tile -> exercises ragged final block

    params = init_params(key, in_channels, num_classes)
    prepped = prepare_params(params, num_classes)   # one-time prep, hoisted out of forward
    x = jax.random.normal(jax.random.fold_in(key, 999), (N, in_channels), jnp.float32)

    ref = reference_forward(x, params, num_classes)

    # 1) Default (production-style) configuration: large tile, clamped to the batch.
    logits, passthrough = dnn_ordinal_forward(x, prepped)
    logits = jax.block_until_ready(logits)
    assert logits.shape == (N, num_classes)
    assert jnp.allclose(logits, ref, atol=2e-2, rtol=2e-2), "mismatch vs pure-JAX reference"
    assert jnp.allclose(passthrough, x), "input passthrough mismatch"

    # 2) Small tile: exercises a multi-step grid plus a ragged final block.
    logits2, _ = dnn_ordinal_forward(x, prepped, tile_m=128)
    logits2 = jax.block_until_ready(logits2)
    assert jnp.allclose(logits2, ref, atol=2e-2, rtol=2e-2), "mismatch (tiled path)"

    print("KERNEL_OK")
</pallas_src>

<mosaic_0001>
module attributes {stable_mosaic.version = 11 : i64} {
  func.func @_dnn_ordinal_kernel(%arg0: i32, %arg1: memref<256x32xf32, #tpu.memory_space<vmem>>, %arg2: memref<32x256xbf16, #tpu.memory_space<vmem>>, %arg3: memref<1x256xf32, #tpu.memory_space<vmem>>, %arg4: memref<256x128xbf16, #tpu.memory_space<vmem>>, %arg5: memref<1x128xf32, #tpu.memory_space<vmem>>, %arg6: memref<128x128xbf16, #tpu.memory_space<vmem>>, %arg7: memref<1x128xf32, #tpu.memory_space<vmem>>, %arg8: memref<128x128xbf16, #tpu.memory_space<vmem>>, %arg9: memref<1x128xf32, #tpu.memory_space<vmem>>, %arg10: memref<256x128xbf16, #tpu.memory_space<vmem>>) attributes {dimension_semantics = [#tpu.dimension_semantics<parallel>], iteration_bounds = array<i64: 1>, scalar_prefetch = 0 : i64, scratch_operands = 0 : i64, tpu.core_type = #tpu.core_type<tc>, window_params = [{transform_indices = @transform_0, window_bounds = array<i64: 256, 32>}, {pipeline_mode = #tpu.pipeline_mode<synchronous>, transform_indices = @transform_1, window_bounds = array<i64: 32, 256>}, {pipeline_mode = #tpu.pipeline_mode<synchronous>, transform_indices = @transform_2, window_bounds = array<i64: 1, 256>}, {pipeline_mode = #tpu.pipeline_mode<synchronous>, transform_indices = @transform_3, window_bounds = array<i64: 256, 128>}, {pipeline_mode = #tpu.pipeline_mode<synchronous>, transform_indices = @transform_4, window_bounds = array<i64: 1, 128>}, {pipeline_mode = #tpu.pipeline_mode<synchronous>, transform_indices = @transform_5, window_bounds = array<i64: 128, 128>}, {pipeline_mode = #tpu.pipeline_mode<synchronous>, transform_indices = @transform_6, window_bounds = array<i64: 1, 128>}, {pipeline_mode = #tpu.pipeline_mode<synchronous>, transform_indices = @transform_7, window_bounds = array<i64: 128, 128>}, {pipeline_mode = #tpu.pipeline_mode<synchronous>, transform_indices = @transform_8, window_bounds = array<i64: 1, 128>}, {transform_indices = @transform_9, window_bounds = array<i64: 256, 128>}]} {
    %c0 = arith.constant 0 : index
    %c0_0 = arith.constant 0 : index
    %0 = vector.load %arg1[%c0, %c0_0] : memref<256x32xf32, #tpu.memory_space<vmem>>, vector<256x32xf32>
    %1 = arith.truncf %0 : vector<256x32xf32> to vector<256x32xbf16>
    %c0_1 = arith.constant 0 : index
    %c0_2 = arith.constant 0 : index
    %2 = vector.load %arg2[%c0_1, %c0_2] : memref<32x256xbf16, #tpu.memory_space<vmem>>, vector<32x256xbf16>
    %cst = arith.constant dense<0.000000e+00> : vector<256x256xf32>
    %3 = tpu.matmul %1, %2, %cst {dimension_numbers = #tpu.dot_dimension_numbers<[1], [0], [0], [1], [0, 0, 1, 1], [], []>} : vector<256x32xbf16>, vector<32x256xbf16>, vector<256x256xf32> -> vector<256x256xf32>
    %c0_3 = arith.constant 0 : index
    %c0_4 = arith.constant 0 : index
    %4 = vector.load %arg3[%c0_3, %c0_4] : memref<1x256xf32, #tpu.memory_space<vmem>>, vector<1x256xf32>
    %5 = vector.broadcast %4 : vector<1x256xf32> to vector<256x256xf32>
    %6 = arith.addf %3, %5 : vector<256x256xf32>
    %cst_5 = arith.constant 0.000000e+00 : f32
    %7 = vector.broadcast %cst_5 : f32 to vector<256x256xf32>
    %8 = arith.maximumf %6, %7 : vector<256x256xf32>
    %9 = arith.truncf %8 : vector<256x256xf32> to vector<256x256xbf16>
    %c0_6 = arith.constant 0 : index
    %c0_7 = arith.constant 0 : index
    %10 = vector.load %arg4[%c0_6, %c0_7] : memref<256x128xbf16, #tpu.memory_space<vmem>>, vector<256x128xbf16>
    %cst_8 = arith.constant dense<0.000000e+00> : vector<256x128xf32>
    %11 = tpu.matmul %9, %10, %cst_8 {dimension_numbers = #tpu.dot_dimension_numbers<[1], [0], [0], [1], [0, 0, 1, 1], [], []>} : vector<256x256xbf16>, vector<256x128xbf16>, vector<256x128xf32> -> vector<256x128xf32>
    %c0_9 = arith.constant 0 : index
    %c0_10 = arith.constant 0 : index
    %12 = vector.load %arg5[%c0_9, %c0_10] : memref<1x128xf32, #tpu.memory_space<vmem>>, vector<1x128xf32>
    %13 = vector.broadcast %12 : vector<1x128xf32> to vector<256x128xf32>
    %14 = arith.addf %11, %13 : vector<256x128xf32>
    %cst_11 = arith.constant 0.000000e+00 : f32
    %15 = vector.broadcast %cst_11 : f32 to vector<256x128xf32>
    %16 = arith.maximumf %14, %15 : vector<256x128xf32>
    %17 = arith.truncf %16 : vector<256x128xf32> to vector<256x128xbf16>
    %c0_12 = arith.constant 0 : index
    %c0_13 = arith.constant 0 : index
    %18 = vector.load %arg6[%c0_12, %c0_13] : memref<128x128xbf16, #tpu.memory_space<vmem>>, vector<128x128xbf16>
    %cst_14 = arith.constant dense<0.000000e+00> : vector<256x128xf32>
    %19 = tpu.matmul %17, %18, %cst_14 {dimension_numbers = #tpu.dot_dimension_numbers<[1], [0], [0], [1], [0, 0, 1, 1], [], []>} : vector<256x128xbf16>, vector<128x128xbf16>, vector<256x128xf32> -> vector<256x128xf32>
    %c0_15 = arith.constant 0 : index
    %c0_16 = arith.constant 0 : index
    %20 = vector.load %arg7[%c0_15, %c0_16] : memref<1x128xf32, #tpu.memory_space<vmem>>, vector<1x128xf32>
    %21 = vector.broadcast %20 : vector<1x128xf32> to vector<256x128xf32>
    %22 = arith.addf %19, %21 : vector<256x128xf32>
    %cst_17 = arith.constant 0.000000e+00 : f32
    %23 = vector.broadcast %cst_17 : f32 to vector<256x128xf32>
    %24 = arith.maximumf %22, %23 : vector<256x128xf32>
    %25 = arith.truncf %24 : vector<256x128xf32> to vector<256x128xbf16>
    %c0_18 = arith.constant 0 : index
    %c0_19 = arith.constant 0 : index
    %26 = vector.load %arg8[%c0_18, %c0_19] : memref<128x128xbf16, #tpu.memory_space<vmem>>, vector<128x128xbf16>
    %cst_20 = arith.constant dense<0.000000e+00> : vector<256x128xf32>
    %27 = tpu.matmul %25, %26, %cst_20 {dimension_numbers = #tpu.dot_dimension_numbers<[1], [0], [0], [1], [0, 0, 1, 1], [], []>} : vector<256x128xbf16>, vector<128x128xbf16>, vector<256x128xf32> -> vector<256x128xf32>
    %c0_21 = arith.constant 0 : index
    %c0_22 = arith.constant 0 : index
    %28 = vector.load %arg9[%c0_21, %c0_22] : memref<1x128xf32, #tpu.memory_space<vmem>>, vector<1x128xf32>
    %29 = vector.broadcast %28 : vector<1x128xf32> to vector<256x128xf32>
    %30 = arith.addf %27, %29 : vector<256x128xf32>
    %31 = arith.truncf %30 : vector<256x128xf32> to vector<256x128xbf16>
    %c0_23 = arith.constant 0 : index
    %c0_24 = arith.constant 0 : index
    %32 = vector.load %arg10[%c0_23, %c0_24] : memref<256x128xbf16, #tpu.memory_space<vmem>>, vector<256x128xbf16>
    tpu.vector_store %arg10[%c0_23, %c0_24], %31 {strides = array<i32>} : memref<256x128xbf16, #tpu.memory_space<vmem>>, vector<256x128xbf16>,
    return
  }
  func.func @transform_0(%arg0: i32) -> (i32, i32) {
    %c0_i32 = arith.constant 0 : i32
    %c0_i32_0 = arith.constant 0 : i32
    return %arg0, %c0_i32 : i32, i32
  }
  func.func @transform_1(%arg0: i32) -> (i32, i32) {
    %c0_i32 = arith.constant 0 : i32
    %c0_i32_0 = arith.constant 0 : i32
    %c0_i32_1 = arith.constant 0 : i32
    return %c0_i32, %c0_i32_0 : i32, i32
  }
  func.func @transform_2(%arg0: i32) -> (i32, i32) {
    %c0_i32 = arith.constant 0 : i32
    %c0_i32_0 = arith.constant 0 : i32
    %c0_i32_1 = arith.constant 0 : i32
    return %c0_i32, %c0_i32_0 : i32, i32
  }
  func.func @transform_3(%arg0: i32) -> (i32, i32) {
    %c0_i32 = arith.constant 0 : i32
    %c0_i32_0 = arith.constant 0 : i32
    %c0_i32_1 = arith.constant 0 : i32
    return %c0_i32, %c0_i32_0 : i32, i32
  }
  func.func @transform_4(%arg0: i32) -> (i32, i32) {
    %c0_i32 = arith.constant 0 : i32
    %c0_i32_0 = arith.constant 0 : i32
    %c0_i32_1 = arith.constant 0 : i32
    return %c0_i32, %c0_i32_0 : i32, i32
  }
  func.func @transform_5(%arg0: i32) -> (i32, i32) {
    %c0_i32 = arith.constant 0 : i32
    %c0_i32_0 = arith.constant 0 : i32
    %c0_i32_1 = arith.constant 0 : i32
    return %c0_i32, %c0_i32_0 : i32, i32
  }
  func.func @transform_6(%arg0: i32) -> (i32, i32) {
    %c0_i32 = arith.constant 0 : i32
    %c0_i32_0 = arith.constant 0 : i32
    %c0_i32_1 = arith.constant 0 : i32
    return %c0_i32, %c0_i32_0 : i32, i32
  }
  func.func @transform_7(%arg0: i32) -> (i32, i32) {
    %c0_i32 = arith.constant 0 : i32
    %c0_i32_0 = arith.constant 0 : i32
    %c0_i32_1 = arith.constant 0 : i32
    return %c0_i32, %c0_i32_0 : i32, i32
  }
  func.func @transform_8(%arg0: i32) -> (i32, i32) {
    %c0_i32 = arith.constant 0 : i32
    %c0_i32_0 = arith.constant 0 : i32
    %c0_i32_1 = arith.constant 0 : i32
    return %c0_i32, %c0_i32_0 : i32, i32
  }
  func.func @transform_9(%arg0: i32) -> (i32, i32) {
    %c0_i32 = arith.constant 0 : i32
    %c0_i32_0 = arith.constant 0 : i32
    return %arg0, %c0_i32 : i32, i32
  }
}

</mosaic_0001>

<bundles_post_ra>
// kernel: tpu_custom_call.1
= control target key start
LH: loop header
LB: loop body
LE: loop exit
PB: predicated region body
PF: predicated region fallthrough
CT: control target
= control target key end

     0   :  { %14 = vsyncpa [#allocation3], 0  ;;  %s2569_s0 = inlined_call_operand.vmem [shape: f32[200,32], index: 0, kind: input, shape index: {}]   ;;  %s2570_s1 = inlined_call_operand.hbm [shape: bf16[32,256], index: 1, kind: input, shape index: {}]   ;;  %s2571_s2 = inlined_call_operand.vmem [shape: f32[1,256], index: 2, kind: input, shape index: {}]   ;;  %s2572_s3 = inlined_call_operand.vmem [shape: bf16[256,128], index: 3, kind: input, shape index: {}]   ;;  %s2573_s4 = inlined_call_operand.vmem [shape: f32[1,128], index: 4, kind: input, shape index: {}]   ;;  %s2574_s5 = inlined_call_operand.vmem [shape: bf16[128,128], index: 5, kind: input, shape index: {}]   ;;  %s2575_s6 = inlined_call_operand.vmem [shape: f32[1,128], index: 6, kind: input, shape index: {}]   ;;  %s2576_s7 = inlined_call_operand.vmem [shape: bf16[128,128], index: 7, kind: input, shape index: {}]   ;;  %s2577_s8 = inlined_call_operand.vmem [shape: f32[1,128], index: 8, kind: input, shape index: {}]   ;;  %s2578_s9 = inlined_call_operand.hbm [shape: bf16[200,128], index: 9, kind: output, shape index: {}]  }
   0x1   :  { %15 = vsyncpa [#allocation4], 0  ;;  %s2082_s30 = smov [#allocation2]   ;;  %s2034_s13 = scalar_lea.hbm %s2570_s1, 512 }
   0x2   :  { %s23_s10 = sshll.u32 %s2082_s30, 4  ;;  %p2035_p0 = scmp.ne.s32.totalorder %s2570_s1, %s2034_s13  ;;  %s24_s10 = int_to_ptr.vmem [resolvable:$true] %s23_s10 }
   0x3   :  { %p2038_p1 = scmp.lt.u32.totalorder %s2034_s13, %s2570_s1 }
   0x5   :  { %p2040_p2 = pnand %p2038_p1, %p2035_p0 }
   0x7   :  { %2043 = shalt.err (!%p2040_p2)
}
   0x8   :  { %s2044_s18 = scalar_lea.vmem %s24_s10, 512  ;;  %p2049_p4 = scmp.lt.s32.totalorder %s24_s10, %s24_s10 }
   0x9   :  { %p2045_p3 = scmp.ne.s32.totalorder %s24_s10, %s2044_s18  ;;  %p2050_p5 = scmp.lt.s32.totalorder %s2044_s18, %s2044_s18 }
   0xb   :  { %p2051_p6 = por %p2050_p5, %p2049_p4 }
   0xd   :  { %p2052_p7 = pnand %p2051_p6, %p2045_p3 }
   0xf   :  { %2055 = shalt.err (!%p2052_p7)
}
  0x10   :  { %s2083_s19 = smov 128   ;;  %s2084_s20 = smov 8  }
  0x11   :  { %29 = dma.hbm_to_vmem [thread:$0]  %s2570_s1, 512, %s24_s10, [#allocation3], %s2083_s19, %s2083_s19, %s2084_s20  }
  0x12   :  { %2078 = dma.done.wait [#allocation3], 512  }
  0x13   :  { %2079 = vsyncadd [#allocation3], 4294966784  ;;  %v2085_v0 = vmov 0   ;;  %v1996_v1 = vld [vmem:[#allocation2 + $0x4] ss:$8 sps:$4 sm:$0xff]   ;;  %v48_v5 = vld [vmem:[%s2569_s0] sm:$0xff] }
  0x14   :  { %213 = vmatprep.mubr.bf16.mxu0 %v2085_v0  ;;  %v1998_v2 = vld [vmem:[#allocation2] ss:$8 sps:$4 sm:$0xff]   ;;  %181 = vmatprep.subr.bf16.mxu0 %v1996_v1  ;;  %v1999_v3 = vld [vmem:[#allocation2 + $0x14] ss:$8 sps:$4 sm:$0xff]   ;;  %v2001_v4 = vld [vmem:[#allocation2 + $0x10] ss:$8 sps:$4 sm:$0xff]  }
  0x15   :  { %182 = vmatpush1.bf16.msra.mxu0 %v1998_v2  ;;  %v49_v6 = vld [vmem:[%s2569_s0 + $0x8] sm:$0xff]  ;;  %vm132_vm0 = vcmask 261120   ;;  %v50_v8 = vld [vmem:[%s2569_s0 + $0x10] sm:$0xff]  ;;  %v51_v9 = vld [vmem:[%s2569_s0 + $0x18] sm:$0xff] }
  0x16   :  { %183 = vmatprep.subr.bf16.mxu0 %v1999_v3  ;;  %v80_v7 = vpack.c.bf16 %v49_v6, %v48_v5  ;;  %v81_v10 = vpack.c.bf16 %v51_v9, %v50_v8  ;;  %v2002_v11 = vld [vmem:[%s2572_s3 + $0x40] sm:$0xff]   ;;  %v2004_v13 = vld [vmem:[%s2572_s3 + $0x48] sm:$0xff]   ;;  %v2006_v16 = vld [vmem:[%s2572_s3 + $0x50] sm:$0xff]   ;;  %v102_v6 = vlaneseq }
  0x17   :  { %v2003_v12 = vld [vmem:[%s2572_s3] sm:$0xff]   ;;  %1717 = vmatprep.subr.bf16.mxu1 %v2002_v11  ;;  %v2005_v15 = vld [vmem:[%s2572_s3 + $0x8] sm:$0xff]   ;;  %v2007_v18 = vld [vmem:[%s2572_s3 + $0x10] sm:$0xff]  }
  0x18   :  { %v52_v14 = vld [vmem:[%s2569_s0 + $0x20] sm:$0xff]  ;;  %1718 = vmatpush3.bf16.msra.mxu1 %v2003_v12  ;;  %v53_v17 = vld [vmem:[%s2569_s0 + $0x28] sm:$0xff]  ;;  %v2008_v20 = vld [vmem:[%s2572_s3 + $0x58] sm:$0xff]  }
  0x19   :  { %184 = vmatpush1.bf16.msra.mxu0 %v2001_v4  ;;  %1719 = vmatprep.subr.bf16.mxu1 %v2004_v13  ;;  %v82_v19 = vpack.c.bf16 %v53_v17, %v52_v14  ;;  %v2009_v21 = vld [vmem:[%s2572_s3 + $0x18] sm:$0xff]   ;;  %v2010_v22 = vld [vmem:[%s2572_s3 + $0x60] sm:$0xff]   ;;  %v54_v23 = vld [vmem:[%s2569_s0 + $0x30] sm:$0xff] }
  0x1a   :  { %v55_v24 = vld [vmem:[%s2569_s0 + $0x38] sm:$0xff]  ;;  %v2011_v25 = vld [vmem:[%s2572_s3 + $0x20] sm:$0xff]   ;;  %v2012_v26 = vld [vmem:[%s2572_s3 + $0x68] sm:$0xff]  }
  0x1b   :  { %v83_v27 = vpack.c.bf16 %v55_v24, %v54_v23  ;;  %v56_v28 = vld [vmem:[%s2569_s0 + $0x40] sm:$0xff]  ;;  %v57_v29 = vld [vmem:[%s2569_s0 + $0x48] sm:$0xff]  ;;  %v58_v31 = vld [vmem:[%s2569_s0 + $0x50] sm:$0xff] }
  0x1c   :  { %1507 = vmatmul.mubr.msk.bf16.vlgmr.msra.gmra.mrb[0].mxu0 %vm132_vm0, %v80_v7  ;;  %1720 = vmatpush3.bf16.msra.mxu1 %v2005_v15  ;;  %v84_v30 = vpack.c.bf16 %v57_v29, %v56_v28  ;;  %v59_v32 = vld [vmem:[%s2569_s0 + $0x58] sm:$0xff]  ;;  %v60_v34 = vld [vmem:[%s2569_s0 + $0x60] sm:$0xff]  ;;  %v61_v35 = vld [vmem:[%s2569_s0 + $0x68] sm:$0xff]  ;;  %v103_v7 = vshrl.u32 %v102_v6, 7 }
  0x1d   :  { %223 = vmatprep.mubr.bf16.mxu0 %v2085_v0  ;;  %1721 = vmatprep.subr.bf16.mxu1 %v2006_v16  ;;  %v85_v33 = vpack.c.bf16 %v59_v32, %v58_v31  ;;  %v86_v36 = vpack.c.bf16 %v61_v35, %v60_v34  ;;  %v62_v37 = vld [vmem:[%s2569_s0 + $0x70] sm:$0xff]  ;;  %v63_v38 = vld [vmem:[%s2569_s0 + $0x78] sm:$0xff]  ;;  %v64_v40 = vld [vmem:[%s2569_s0 + $0x80] sm:$0xff] }
  0x1e   :  { %v87_v39 = vpack.c.bf16 %v63_v38, %v62_v37  ;;  %v65_v41 = vld [vmem:[%s2569_s0 + $0x88] sm:$0xff]  ;;  %v66_v43 = vld [vmem:[%s2569_s0 + $0x90] sm:$0xff]  ;;  %v67_v44 = vld [vmem:[%s2569_s0 + $0x98] sm:$0xff]  ;;  %v104_v8 = vsub.s32 0, %v103_v7 }
  0x1f   :  { %v88_v42 = vpack.c.bf16 %v65_v41, %v64_v40  ;;  %v89_v45 = vpack.c.bf16 %v67_v44, %v66_v43  ;;  %v68_v46 = vld [vmem:[%s2569_s0 + $0xa0] sm:$0xff]  ;;  %v69_v47 = vld [vmem:[%s2569_s0 + $0xa8] sm:$0xff]  ;;  %v70_v49 = vld [vmem:[%s2569_s0 + $0xb0] sm:$0xff] }
  0x20   :  { %1722 = vmatpush3.bf16.msra.mxu1 %v2007_v18  ;;  %v90_v48 = vpack.c.bf16 %v69_v47, %v68_v46  ;;  %v71_v50 = vld [vmem:[%s2569_s0 + $0xb8] sm:$0xff]  ;;  %v2013_v51 = vld [vmem:[%s2572_s3 + $0x28] sm:$0xff]   ;;  %v2014_v53 = vld [vmem:[%s2572_s3 + $0x70] sm:$0xff]  }
  0x21   :  { %1723 = vmatprep.subr.bf16.mxu1 %v2008_v20  ;;  %v91_v52 = vpack.c.bf16 %v71_v50, %v70_v49  ;;  %v2015_v54 = vld [vmem:[%s2572_s3 + $0x30] sm:$0xff]   ;;  %v2016_v55 = vld [vmem:[%s2572_s3 + $0x78] sm:$0xff]   ;;  %v72_v56 = vld [vmem:[%s2569_s0 + $0xc0] sm:$0xff] }
  0x22   :  { %v73_v57 = vld [vmem:[%s2569_s0 + $0xc8] sm:$0xff]  ;;  %v2017_v58 = vld [vmem:[%s2572_s3 + $0x38] sm:$0xff]   ;;  %v74_v60 = vld [vmem:[%s2569_s0 + $0xd0] sm:$0xff] }
  0x23   :  { %v92_v59 = vpack.c.bf16 %v73_v57, %v72_v56  ;;  %v75_v61 = vld [vmem:[%s2569_s0 + $0xd8] sm:$0xff]  ;;  %v76_v63 = vld [vmem:[%s2569_s0 + $0xe0] sm:$0xff]  ;;  %v77_v1 = vld [vmem:[%s2569_s0 + $0xe8] sm:$0xff] }
  0x24   :  { %1508 = vmatmul.mubr.msk.bf16.gmra.mrb[4].mxu0 %vm132_vm0, %v81_v10  ;;  %1724 = vmatpush3.bf16.msra.mxu1 %v2009_v21  ;;  %v93_v62 = vpack.c.bf16 %v75_v61, %v74_v60  ;;  %v94_v2 = vpack.c.bf16 %v77_v1, %v76_v63  ;;  %v78_v3 = vld [vmem:[%s2569_s0 + $0xf0] sm:$0xff]  ;;  %v79_v4 = vld [vmem:[%s2569_s0 + $0xf8] sm:$0xff]  ;;  %v100_v9 = vld [vmem:[%s2571_s2] sm:$0x3]  ;;  %v108_v10 = vsub.s32 1, %v103_v7 }
  0x25   :  { %233 = vmatprep.mubr.bf16.mxu0 %v2085_v0  ;;  %1725 = vmatprep.subr.bf16.mxu1 %v2010_v22  ;;  %v95_v5 = vpack.c.bf16 %v79_v4, %v78_v3  ;;  %v2019_v20 = vld [vmem:[%s2574_s5 + $0x8] sm:$0xff]  }
  0x26   :  { %v2332_v11 = vrot.slane %v100_v9, %v108_v10 }
  0x28   :  { %1726 = vmatpush3.bf16.msra.mxu1 %v2011_v25 }
  0x29   :  { %1727 = vmatprep.subr.bf16.mxu1 %v2012_v26 }
  0x2c   :  { %1509 = vmatmul.mubr.msk.bf16.gmra.mrb[8].mxu0 %vm132_vm0, %v82_v19  ;;  %1728 = vmatpush3.bf16.msra.mxu1 %v2013_v51  ;;  %v2018_v19 = vld [vmem:[%s2574_s5] sm:$0xff]  }
  0x2d   :  { %243 = vmatprep.mubr.bf16.mxu0 %v2085_v0  ;;  %1729 = vmatprep.subr.bf16.mxu1 %v2014_v53 }
  0x2e   :  { %1877 = vmatprep.subr.bf16.mxu0 %v2018_v19 }
  0x2f   :  { %1878 = vmatpush3.bf16.msra.mxu0 %v2018_v19 }
  0x30   :  { %1730 = vmatpush3.bf16.msra.mxu1 %v2015_v54  ;;  %1879 = vmatprep.subr.bf16.mxu0 %v2019_v20 }
  0x31   :  { %1731 = vmatprep.subr.bf16.mxu1 %v2016_v55 }
  0x33   :  { %1880 = vmatpush3.bf16.msra.mxu0 %v2019_v20 }
  0x34   :  { %1510 = vmatmul.mubr.msk.bf16.gmra.mrb[12].mxu0 %vm132_vm0, %v83_v27  ;;  %1732 = vmatpush3.bf16.msra.mxu1 %v2017_v58  ;;  %v2020_v27 = vld [vmem:[%s2574_s5 + $0x10] sm:$0xff]  }
  0x35   :  { %253 = vmatprep.mubr.bf16.mxu0 %v2085_v0  ;;  %1881 = vmatprep.subr.bf16.mxu0 %v2020_v27 }
  0x37   :  { %1882 = vmatpush3.bf16.msra.mxu0 %v2020_v27 }
  0x3c   :  { %1511 = vmatmul.mubr.msk.bf16.gmra.mrb[16].mxu0 %vm132_vm0, %v84_v30 }
  0x3d   :  { %263 = vmatprep.mubr.bf16.mxu0 %v2085_v0 }
  0x44   :  { %1512 = vmatmul.mubr.msk.bf16.gmra.mrb[20].mxu0 %vm132_vm0, %v85_v33 }
  0x45   :  { %273 = vmatprep.mubr.bf16.mxu0 %v2085_v0 }
  0x4c   :  { %1513 = vmatmul.mubr.msk.bf16.gmra.mrb[24].mxu0 %vm132_vm0, %v86_v36  ;;  %v2021_v36 = vld [vmem:[%s2574_s5 + $0x18] sm:$0xff]  }
  0x4d   :  { %283 = vmatprep.mubr.bf16.mxu0 %v2085_v0  ;;  %1883 = vmatprep.subr.bf16.mxu0 %v2021_v36 }
  0x4e   :  { %1884 = vmatpush3.bf16.msra.mxu0 %v2021_v36 }
  0x54   :  { %1514 = vmatmul.mubr.msk.bf16.gmra.mrb[28].mxu0 %vm132_vm0, %v87_v39 }
  0x55   :  { %293 = vmatprep.mubr.bf16.mxu0 %v2085_v0 }
  0x5c   :  { %1515 = vmatmul.mubr.msk.bf16.gmra.mrb[32].mxu0 %vm132_vm0, %v88_v42 }
  0x5d   :  { %303 = vmatprep.mubr.bf16.mxu0 %v2085_v0 }
  0x64   :  { %1516 = vmatmul.mubr.msk.bf16.gmra.mrb[36].mxu0 %vm132_vm0, %v89_v45 }
  0x65   :  { %313 = vmatprep.mubr.bf16.mxu0 %v2085_v0 }
  0x6c   :  { %1517 = vmatmul.mubr.msk.bf16.gmra.mrb[40].mxu0 %vm132_vm0, %v90_v48 }
  0x6d   :  { %323 = vmatprep.mubr.bf16.mxu0 %v2085_v0 }
  0x74   :  { %1518 = vmatmul.mubr.msk.bf16.gmra.mrb[44].mxu0 %vm132_vm0, %v91_v52 }
  0x75   :  { %333 = vmatprep.mubr.bf16.mxu0 %v2085_v0 }
  0x7c   :  { %1519 = vmatmul.mubr.msk.bf16.gmra.mrb[48].mxu0 %vm132_vm0, %v92_v59 }
  0x7d   :  { %343 = vmatprep.mubr.bf16.mxu0 %v2085_v0 }
  0x84   :  { %1520 = vmatmul.mubr.msk.bf16.gmra.mrb[52].mxu0 %vm132_vm0, %v93_v62 }
  0x85   :  { %353 = vmatprep.mubr.bf16.mxu0 %v2085_v0 }
  0x8c   :  { %1521 = vmatmul.mubr.msk.bf16.gmra.mrb[56].mxu0 %vm132_vm0, %v94_v2 }
  0x8d   :  { %363 = vmatprep.mubr.bf16.mxu0 %v2085_v0  ;;  %v2330_v0 = vrot.slane %v100_v9, %v104_v8 }
  0x94   :  { %1522 = vmatmul.mubr.msk.bf16.gmra.mrb[60].mxu0 %vm132_vm0, %v95_v5 }
  0xef   :  { %v215_v12 = vpop.f32.mrb[0].mxu0 }
  0xf0   :  { %v216_v13 = vadd.f32 %v215_v12, %v2330_v0  ;;  %v217_v14 = vpop.f32.mrb[1].mxu0 }
  0xf1   :  { %v218_v15 = vadd.f32 %v217_v14, %v2332_v11  ;;  %v219_v16 = vpop.f32.mrb[2].mxu0 }
  0xf2   :  { %v220_v17 = vadd.f32 %v219_v16, %v2330_v0  ;;  %v221_v18 = vpop.f32.mrb[3].mxu0  ;;  %v374_v22 = vmax.f32 %v216_v13, 0.0 }
  0xf3   :  { %v222_v21 = vadd.f32 %v221_v18, %v2332_v11  ;;  %v375_v24 = vmax.f32 %v218_v15, 0.0 }
  0xf4   :  { %v376_v23 = vmax.f32 %v220_v17, 0.0 }
  0xf5   :  { %v377_v25 = vmax.f32 %v222_v21, 0.0 }
  0xf6   :  { %v438_v26 = vpack.c.bf16 %v376_v23, %v374_v22 }
  0xf7   :  { %v225_v28 = vpop.f32.mrb[4].mxu0  ;;  %v439_v29 = vpack.c.bf16 %v377_v25, %v375_v24 }
  0xf8   :  { %v226_v30 = vadd.f32 %v225_v28, %v2330_v0  ;;  %v227_v31 = vpop.f32.mrb[5].mxu0 }
  0xf9   :  { %v228_v32 = vadd.f32 %v227_v31, %v2332_v11  ;;  %v229_v33 = vpop.f32.mrb[6].mxu0  ;;  %637 = vmatprep.mubr.bf16.mxu1 %v439_v29 }
  0xfa   :  { %v230_v34 = vadd.f32 %v229_v33, %v2330_v0  ;;  %v231_v35 = vpop.f32.mrb[7].mxu0  ;;  %638 = vmatmul.mubr.bf16.vlgmr.msra.gmra.mrb[0].mxu1 %v438_v26  ;;  %v378_v38 = vmax.f32 %v226_v30, 0.0 }
  0xfb   :  { %v232_v37 = vadd.f32 %v231_v35, %v2332_v11  ;;  %v379_v40 = vmax.f32 %v228_v32, 0.0 }
  0xfc   :  { %v380_v39 = vmax.f32 %v230_v34, 0.0 }
  0xfd   :  { %v381_v41 = vmax.f32 %v232_v37, 0.0 }
  0xfe   :  { %v440_v42 = vpack.c.bf16 %v380_v39, %v378_v38 }
  0xff   :  { %v441_v43 = vpack.c.bf16 %v381_v41, %v379_v40  ;;  %v235_v44 = vpop.f32.mrb[8].mxu0 }
 0x100   :  { %v236_v45 = vadd.f32 %v235_v44, %v2330_v0  ;;  %v237_v46 = vpop.f32.mrb[9].mxu0 }
 0x101   :  { %v238_v47 = vadd.f32 %v237_v46, %v2332_v11  ;;  %v239_v48 = vpop.f32.mrb[10].mxu0  ;;  %645 = vmatprep.mubr.bf16.mxu1 %v441_v43 }
 0x102   :  { %v240_v49 = vadd.f32 %v239_v48, %v2330_v0  ;;  %v241_v50 = vpop.f32.mrb[11].mxu0  ;;  %646 = vmatmul.mubr.bf16.gmra.mrb[4].mxu1 %v440_v42  ;;  %v382_v52 = vmax.f32 %v236_v45, 0.0 }
 0x103   :  { %v242_v51 = vadd.f32 %v241_v50, %v2332_v11  ;;  %v383_v54 = vmax.f32 %v238_v47, 0.0 }
 0x104   :  { %v384_v53 = vmax.f32 %v240_v49, 0.0 }
 0x105   :  { %v385_v55 = vmax.f32 %v242_v51, 0.0 }
 0x106   :  { %v442_v56 = vpack.c.bf16 %v384_v53, %v382_v52 }
 0x107   :  { %v443_v57 = vpack.c.bf16 %v385_v55, %v383_v54  ;;  %v245_v58 = vpop.f32.mrb[12].mxu0 }
 0x108   :  { %v246_v59 = vadd.f32 %v245_v58, %v2330_v0  ;;  %v247_v60 = vpop.f32.mrb[13].mxu0 }
 0x109   :  { %v248_v61 = vadd.f32 %v247_v60, %v2332_v11  ;;  %v249_v62 = vpop.f32.mrb[14].mxu0  ;;  %653 = vmatprep.mubr.bf16.mxu1 %v443_v57 }
 0x10a   :  { %v250_v63 = vadd.f32 %v249_v62, %v2330_v0  ;;  %v251_v1 = vpop.f32.mrb[15].mxu0  ;;  %654 = vmatmul.mubr.bf16.gmra.mrb[8].mxu1 %v442_v56  ;;  %v386_v3 = vmax.f32 %v246_v59, 0.0 }
 0x10b   :  { %v252_v2 = vadd.f32 %v251_v1, %v2332_v11  ;;  %v387_v5 = vmax.f32 %v248_v61, 0.0 }
 0x10c   :  { %v388_v4 = vmax.f32 %v250_v63, 0.0 }
 0x10d   :  { %v389_v6 = vmax.f32 %v252_v2, 0.0 }
 0x10e   :  { %v444_v7 = vpack.c.bf16 %v388_v4, %v386_v3 }
 0x10f   :  { %v445_v8 = vpack.c.bf16 %v389_v6, %v387_v5  ;;  %v255_v9 = vpop.f32.mrb[16].mxu0 }
 0x110   :  { %v256_v10 = vadd.f32 %v255_v9, %v2330_v0  ;;  %v257_v12 = vpop.f32.mrb[17].mxu0 }
 0x111   :  { %v258_v13 = vadd.f32 %v257_v12, %v2332_v11  ;;  %v259_v14 = vpop.f32.mrb[18].mxu0  ;;  %661 = vmatprep.mubr.bf16.mxu1 %v445_v8 }
 0x112   :  { %v260_v15 = vadd.f32 %v259_v14, %v2330_v0  ;;  %v261_v16 = vpop.f32.mrb[19].mxu0  ;;  %662 = vmatmul.mubr.bf16.gmra.mrb[12].mxu1 %v444_v7  ;;  %v390_v18 = vmax.f32 %v256_v10, 0.0 }
 0x113   :  { %v262_v17 = vadd.f32 %v261_v16, %v2332_v11  ;;  %v391_v20 = vmax.f32 %v258_v13, 0.0 }
 0x114   :  { %v392_v19 = vmax.f32 %v260_v15, 0.0 }
 0x115   :  { %v393_v21 = vmax.f32 %v262_v17, 0.0 }
 0x116   :  { %v446_v22 = vpack.c.bf16 %v392_v19, %v390_v18 }
 0x117   :  { %v447_v23 = vpack.c.bf16 %v393_v21, %v391_v20  ;;  %v265_v24 = vpop.f32.mrb[20].mxu0 }
 0x118   :  { %v266_v25 = vadd.f32 %v265_v24, %v2330_v0  ;;  %v267_v26 = vpop.f32.mrb[21].mxu0 }
 0x119   :  { %v268_v27 = vadd.f32 %v267_v26, %v2332_v11  ;;  %v269_v28 = vpop.f32.mrb[22].mxu0  ;;  %669 = vmatprep.mubr.bf16.mxu1 %v447_v23 }
 0x11a   :  { %v270_v29 = vadd.f32 %v269_v28, %v2330_v0  ;;  %v271_v30 = vpop.f32.mrb[23].mxu0  ;;  %670 = vmatmul.mubr.bf16.gmra.mrb[16].mxu1 %v446_v22  ;;  %v394_v32 = vmax.f32 %v266_v25, 0.0 }
 0x11b   :  { %v272_v31 = vadd.f32 %v271_v30, %v2332_v11  ;;  %v395_v34 = vmax.f32 %v268_v27, 0.0 }
 0x11c   :  { %v396_v33 = vmax.f32 %v270_v29, 0.0 }
 0x11d   :  { %v397_v35 = vmax.f32 %v272_v31, 0.0 }
 0x11e   :  { %v448_v36 = vpack.c.bf16 %v396_v33, %v394_v32 }
 0x11f   :  { %v449_v37 = vpack.c.bf16 %v397_v35, %v395_v34  ;;  %v275_v38 = vpop.f32.mrb[24].mxu0 }
 0x120   :  { %v276_v39 = vadd.f32 %v275_v38, %v2330_v0  ;;  %v277_v40 = vpop.f32.mrb[25].mxu0 }
 0x121   :  { %v278_v41 = vadd.f32 %v277_v40, %v2332_v11  ;;  %v279_v42 = vpop.f32.mrb[26].mxu0  ;;  %677 = vmatprep.mubr.bf16.mxu1 %v449_v37 }
 0x122   :  { %v280_v43 = vadd.f32 %v279_v42, %v2330_v0  ;;  %v281_v44 = vpop.f32.mrb[27].mxu0  ;;  %678 = vmatmul.mubr.bf16.gmra.mrb[20].mxu1 %v448_v36  ;;  %v398_v46 = vmax.f32 %v276_v39, 0.0 }
 0x123   :  { %v282_v45 = vadd.f32 %v281_v44, %v2332_v11  ;;  %v399_v48 = vmax.f32 %v278_v41, 0.0 }
 0x124   :  { %v400_v47 = vmax.f32 %v280_v43, 0.0 }
 0x125   :  { %v401_v49 = vmax.f32 %v282_v45, 0.0 }
 0x126   :  { %v450_v50 = vpack.c.bf16 %v400_v47, %v398_v46 }
 0x127   :  { %v451_v51 = vpack.c.bf16 %v401_v49, %v399_v48  ;;  %v285_v52 = vpop.f32.mrb[28].mxu0 }
 0x128   :  { %v286_v53 = vadd.f32 %v285_v52, %v2330_v0  ;;  %v287_v54 = vpop.f32.mrb[29].mxu0 }
 0x129   :  { %v288_v55 = vadd.f32 %v287_v54, %v2332_v11  ;;  %v289_v56 = vpop.f32.mrb[30].mxu0  ;;  %685 = vmatprep.mubr.bf16.mxu1 %v451_v51 }
 0x12a   :  { %v290_v57 = vadd.f32 %v289_v56, %v2330_v0  ;;  %v291_v58 = vpop.f32.mrb[31].mxu0  ;;  %686 = vmatmul.mubr.bf16.gmra.mrb[24].mxu1 %v450_v50  ;;  %v402_v60 = vmax.f32 %v286_v53, 0.0 }
 0x12b   :  { %v292_v59 = vadd.f32 %v291_v58, %v2332_v11  ;;  %v403_v62 = vmax.f32 %v288_v55, 0.0 }
 0x12c   :  { %v404_v61 = vmax.f32 %v290_v57, 0.0 }
 0x12d   :  { %v405_v63 = vmax.f32 %v292_v59, 0.0 }
 0x12e   :  { %v452_v1 = vpack.c.bf16 %v404_v61, %v402_v60  ;;  %v2022_v61 = vld [vmem:[%s2574_s5 + $0x20] sm:$0xff]  }
 0x12f   :  { %v453_v2 = vpack.c.bf16 %v405_v63, %v403_v62  ;;  %v295_v3 = vpop.f32.mrb[32].mxu0  ;;  %1885 = vmatprep.subr.bf16.mxu0 %v2022_v61 }
 0x130   :  { %v296_v4 = vadd.f32 %v295_v3, %v2330_v0  ;;  %v297_v5 = vpop.f32.mrb[33].mxu0  ;;  %1886 = vmatpush3.bf16.msra.mxu0 %v2022_v61 }
 0x131   :  { %v298_v6 = vadd.f32 %v297_v5, %v2332_v11  ;;  %v299_v7 = vpop.f32.mrb[34].mxu0  ;;  %693 = vmatprep.mubr.bf16.mxu1 %v453_v2 }
 0x132   :  { %v300_v8 = vadd.f32 %v299_v7, %v2330_v0  ;;  %v301_v9 = vpop.f32.mrb[35].mxu0  ;;  %694 = vmatmul.mubr.bf16.gmra.mrb[28].mxu1 %v452_v1  ;;  %v406_v12 = vmax.f32 %v296_v4, 0.0 }
 0x133   :  { %v302_v10 = vadd.f32 %v301_v9, %v2332_v11  ;;  %v407_v14 = vmax.f32 %v298_v6, 0.0  ;;  %v2023_v6 = vld [vmem:[%s2574_s5 + $0x28] sm:$0xff]  }
 0x134   :  { %v408_v13 = vmax.f32 %v300_v8, 0.0  ;;  %1887 = vmatprep.subr.bf16.mxu0 %v2023_v6 }
 0x135   :  { %v409_v15 = vmax.f32 %v302_v10, 0.0  ;;  %1888 = vmatpush3.bf16.msra.mxu0 %v2023_v6 }
 0x136   :  { %v454_v16 = vpack.c.bf16 %v408_v13, %v406_v12 }
 0x137   :  { %v455_v17 = vpack.c.bf16 %v409_v15, %v407_v14  ;;  %v305_v18 = vpop.f32.mrb[36].mxu0  ;;  %v2024_v15 = vld [vmem:[%s2574_s5 + $0x30] sm:$0xff]  }
 0x138   :  { %v306_v19 = vadd.f32 %v305_v18, %v2330_v0  ;;  %v307_v20 = vpop.f32.mrb[37].mxu0  ;;  %1889 = vmatprep.subr.bf16.mxu0 %v2024_v15 }
 0x139   :  { %v308_v21 = vadd.f32 %v307_v20, %v2332_v11  ;;  %v309_v22 = vpop.f32.mrb[38].mxu0  ;;  %701 = vmatprep.mubr.bf16.mxu1 %v455_v17  ;;  %1890 = vmatpush3.bf16.msra.mxu0 %v2024_v15 }
 0x13a   :  { %v310_v23 = vadd.f32 %v309_v22, %v2330_v0  ;;  %v311_v24 = vpop.f32.mrb[39].mxu0  ;;  %702 = vmatmul.mubr.bf16.gmra.mrb[32].mxu1 %v454_v16  ;;  %v410_v26 = vmax.f32 %v306_v19, 0.0 }
 0x13b   :  { %v312_v25 = vadd.f32 %v311_v24, %v2332_v11  ;;  %v411_v28 = vmax.f32 %v308_v21, 0.0 }
 0x13c   :  { %v412_v27 = vmax.f32 %v310_v23, 0.0  ;;  %v2025_v23 = vld [vmem:[%s2574_s5 + $0x38] sm:$0xff]  }
 0x13d   :  { %v413_v29 = vmax.f32 %v312_v25, 0.0  ;;  %1891 = vmatprep.subr.bf16.mxu0 %v2025_v23 }
 0x13e   :  { %v456_v30 = vpack.c.bf16 %v412_v27, %v410_v26  ;;  %1892 = vmatpush3.bf16.msra.mxu0 %v2025_v23 }
 0x13f   :  { %v457_v31 = vpack.c.bf16 %v413_v29, %v411_v28  ;;  %v315_v32 = vpop.f32.mrb[40].mxu0 }
 0x140   :  { %v316_v33 = vadd.f32 %v315_v32, %v2330_v0  ;;  %v317_v34 = vpop.f32.mrb[41].mxu0 }
 0x141   :  { %v318_v35 = vadd.f32 %v317_v34, %v2332_v11  ;;  %v319_v36 = vpop.f32.mrb[42].mxu0  ;;  %709 = vmatprep.mubr.bf16.mxu1 %v457_v31 }
 0x142   :  { %v320_v37 = vadd.f32 %v319_v36, %v2330_v0  ;;  %v321_v38 = vpop.f32.mrb[43].mxu0  ;;  %710 = vmatmul.mubr.bf16.gmra.mrb[36].mxu1 %v456_v30  ;;  %v414_v40 = vmax.f32 %v316_v33, 0.0 }
 0x143   :  { %v322_v39 = vadd.f32 %v321_v38, %v2332_v11  ;;  %v415_v42 = vmax.f32 %v318_v35, 0.0 }
 0x144   :  { %v416_v41 = vmax.f32 %v320_v37, 0.0 }
 0x145   :  { %v417_v43 = vmax.f32 %v322_v39, 0.0 }
 0x146   :  { %v458_v44 = vpack.c.bf16 %v416_v41, %v414_v40 }
 0x147   :  { %v459_v45 = vpack.c.bf16 %v417_v43, %v415_v42  ;;  %v325_v46 = vpop.f32.mrb[44].mxu0 }
 0x148   :  { %v326_v47 = vadd.f32 %v325_v46, %v2330_v0  ;;  %v327_v48 = vpop.f32.mrb[45].mxu0 }
 0x149   :  { %v328_v49 = vadd.f32 %v327_v48, %v2332_v11  ;;  %v329_v50 = vpop.f32.mrb[46].mxu0  ;;  %717 = vmatprep.mubr.bf16.mxu1 %v459_v45 }
 0x14a   :  { %v330_v51 = vadd.f32 %v329_v50, %v2330_v0  ;;  %v331_v52 = vpop.f32.mrb[47].mxu0  ;;  %718 = vmatmul.mubr.bf16.gmra.mrb[40].mxu1 %v458_v44  ;;  %v418_v54 = vmax.f32 %v326_v47, 0.0 }
 0x14b   :  { %v332_v53 = vadd.f32 %v331_v52, %v2332_v11  ;;  %v419_v56 = vmax.f32 %v328_v49, 0.0 }
 0x14c   :  { %v420_v55 = vmax.f32 %v330_v51, 0.0 }
 0x14d   :  { %v421_v57 = vmax.f32 %v332_v53, 0.0 }
 0x14e   :  { %v460_v58 = vpack.c.bf16 %v420_v55, %v418_v54 }
 0x14f   :  { %v461_v59 = vpack.c.bf16 %v421_v57, %v419_v56  ;;  %v335_v60 = vpop.f32.mrb[48].mxu0 }
 0x150   :  { %v336_v62 = vadd.f32 %v335_v60, %v2330_v0  ;;  %v337_v63 = vpop.f32.mrb[49].mxu0 }
 0x151   :  { %v338_v1 = vadd.f32 %v337_v63, %v2332_v11  ;;  %v339_v2 = vpop.f32.mrb[50].mxu0  ;;  %725 = vmatprep.mubr.bf16.mxu1 %v461_v59  ;;  %v2425_v59 = vld [vmem:[%s2573_s4] ss:$0 sm:$0xff] }
 0x152   :  { %v340_v3 = vadd.f32 %v339_v2, %v2330_v0  ;;  %v341_v4 = vpop.f32.mrb[51].mxu0  ;;  %726 = vmatmul.mubr.bf16.gmra.mrb[44].mxu1 %v460_v58  ;;  %v422_v7 = vmax.f32 %v336_v62, 0.0 }
 0x153   :  { %v342_v5 = vadd.f32 %v341_v4, %v2332_v11  ;;  %v423_v9 = vmax.f32 %v338_v1, 0.0  ;;  %v2026_v1 = vld [vmem:[%s2576_s7] sm:$0xff]  }
 0x154   :  { %v424_v8 = vmax.f32 %v340_v3, 0.0  ;;  %1973 = vmatprep.subr.bf16.mxu1 %v2026_v1  ;;  %v2027_v3 = vld [vmem:[%s2576_s7 + $0x8] sm:$0xff]   ;;  %1925 = vmatprep.subr.bf16.mxu0 %v2026_v1 }
 0x155   :  { %v425_v10 = vmax.f32 %v342_v5, 0.0  ;;  %1981 = vmatpush3.bf16.msra.mxu1 %v2026_v1 }
 0x156   :  { %v462_v12 = vpack.c.bf16 %v424_v8, %v422_v7  ;;  %1974 = vmatprep.subr.bf16.mxu1 %v2027_v3 }
 0x157   :  { %v463_v13 = vpack.c.bf16 %v425_v10, %v423_v9  ;;  %v345_v14 = vpop.f32.mrb[52].mxu0 }
 0x158   :  { %v346_v16 = vadd.f32 %v345_v14, %v2330_v0  ;;  %v347_v17 = vpop.f32.mrb[53].mxu0 }
 0x159   :  { %v348_v18 = vadd.f32 %v347_v17, %v2332_v11  ;;  %v349_v19 = vpop.f32.mrb[54].mxu0  ;;  %733 = vmatprep.mubr.bf16.mxu1 %v463_v13  ;;  %1982 = vmatpush3.bf16.msra.mxu1 %v2027_v3  ;;  %v2029_v17 = vld [vmem:[%s2576_s7 + $0x18] sm:$0xff]  }
 0x15a   :  { %v350_v20 = vadd.f32 %v349_v19, %v2330_v0  ;;  %v351_v21 = vpop.f32.mrb[55].mxu0  ;;  %734 = vmatmul.mubr.bf16.gmra.mrb[48].mxu1 %v462_v12  ;;  %v426_v24 = vmax.f32 %v346_v16, 0.0  ;;  %v2028_v12 = vld [vmem:[%s2576_s7 + $0x10] sm:$0xff]  }
 0x15b   :  { %v352_v22 = vadd.f32 %v351_v21, %v2332_v11  ;;  %v427_v26 = vmax.f32 %v348_v18, 0.0  ;;  %1975 = vmatprep.subr.bf16.mxu1 %v2028_v12 }
 0x15c   :  { %v428_v25 = vmax.f32 %v350_v20, 0.0 }
 0x15d   :  { %v429_v27 = vmax.f32 %v352_v22, 0.0  ;;  %1983 = vmatpush3.bf16.msra.mxu1 %v2028_v12 }
 0x15e   :  { %v464_v28 = vpack.c.bf16 %v428_v25, %v426_v24  ;;  %1976 = vmatprep.subr.bf16.mxu1 %v2029_v17  ;;  %v2030_v25 = vld [vmem:[%s2576_s7 + $0x20] sm:$0xff]  }
 0x15f   :  { %v465_v29 = vpack.c.bf16 %v429_v27, %v427_v26  ;;  %v355_v30 = vpop.f32.mrb[56].mxu0 }
 0x160   :  { %v356_v31 = vadd.f32 %v355_v30, %v2330_v0  ;;  %v357_v32 = vpop.f32.mrb[57].mxu0  ;;  %v2031_v30 = vld [vmem:[%s2576_s7 + $0x28] sm:$0xff]  }
 0x161   :  { %v358_v33 = vadd.f32 %v357_v32, %v2332_v11  ;;  %v359_v34 = vpop.f32.mrb[58].mxu0  ;;  %741 = vmatprep.mubr.bf16.mxu1 %v465_v29  ;;  %1984 = vmatpush3.bf16.msra.mxu1 %v2029_v17 }
 0x162   :  { %v360_v35 = vadd.f32 %v359_v34, %v2330_v0  ;;  %v361_v36 = vpop.f32.mrb[59].mxu0  ;;  %742 = vmatmul.mubr.bf16.gmra.mrb[52].mxu1 %v464_v28  ;;  %v430_v38 = vmax.f32 %v356_v31, 0.0  ;;  %1977 = vmatprep.subr.bf16.mxu1 %v2030_v25 }
 0x163   :  { %v362_v37 = vadd.f32 %v361_v36, %v2332_v11  ;;  %v431_v40 = vmax.f32 %v358_v33, 0.0 }
 0x164   :  { %v432_v39 = vmax.f32 %v360_v35, 0.0 }
 0x165   :  { %v433_v41 = vmax.f32 %v362_v37, 0.0  ;;  %1985 = vmatpush3.bf16.msra.mxu1 %v2030_v25 }
 0x166   :  { %v466_v42 = vpack.c.bf16 %v432_v39, %v430_v38  ;;  %1978 = vmatprep.subr.bf16.mxu1 %v2031_v30 }
 0x167   :  { %v467_v43 = vpack.c.bf16 %v433_v41, %v431_v40  ;;  %v365_v44 = vpop.f32.mrb[60].mxu0 }
 0x168   :  { %v366_v45 = vadd.f32 %v365_v44, %v2330_v0  ;;  %v367_v46 = vpop.f32.mrb[61].mxu0 }
 0x169   :  { %v368_v47 = vadd.f32 %v367_v46, %v2332_v11  ;;  %v369_v48 = vpop.f32.mrb[62].mxu0  ;;  %749 = vmatprep.mubr.bf16.mxu1 %v467_v43  ;;  %1986 = vmatpush3.bf16.msra.mxu1 %v2031_v30 }
 0x16a   :  { %v370_v49 = vadd.f32 %v369_v48, %v2330_v0  ;;  %v371_v50 = vpop.f32.mrb[63].mxu0  ;;  %750 = vmatmul.mubr.bf16.gmra.mrb[56].mxu1 %v466_v42  ;;  %v434_v52 = vmax.f32 %v366_v45, 0.0 }
 0x16b   :  { %v372_v51 = vadd.f32 %v371_v50, %v2332_v11  ;;  %v435_v54 = vmax.f32 %v368_v47, 0.0 }
 0x16c   :  { %v436_v53 = vmax.f32 %v370_v49, 0.0 }
 0x16d   :  { %v437_v55 = vmax.f32 %v372_v51, 0.0 }
 0x16e   :  { %v468_v56 = vpack.c.bf16 %v436_v53, %v434_v52 }
 0x16f   :  { %v469_v57 = vpack.c.bf16 %v437_v55, %v435_v54 }
 0x171   :  { %757 = vmatprep.mubr.bf16.mxu1 %v469_v57 }
 0x172   :  { %758 = vmatmul.mubr.bf16.gmra.mrb[60].mxu1 %v468_v56 }
 0x1cd   :  { %v1733_v58 = vpop.f32.mrb[0].mxu1 }
 0x1ce   :  { %v1734_v60 = vpop.f32.mrb[1].mxu1 }
 0x1cf   :  { %v1735_v0 = vadd.f32 %v1734_v60, %v1733_v58  ;;  %v1736_v61 = vpop.f32.mrb[2].mxu1 }
 0x1d0   :  { %v1737_v62 = vpop.f32.mrb[3].mxu1 }
 0x1d1   :  { %v640_v11 = vadd.f32 %v1735_v0, %v2425_v59  ;;  %v1738_v63 = vadd.f32 %v1737_v62, %v1736_v61 }
 0x1d3   :  { %v643_v2 = vadd.f32 %v1738_v63, %v2425_v59  ;;  %v766_v4 = vmax.f32 %v640_v11, 0.0 }
 0x1d5   :  { %v767_v5 = vmax.f32 %v643_v2, 0.0  ;;  %v1739_v6 = vpop.f32.mrb[4].mxu1 }
 0x1d6   :  { %v1740_v7 = vpop.f32.mrb[5].mxu1 }
 0x1d7   :  { %v1741_v8 = vadd.f32 %v1740_v7, %v1739_v6  ;;  %v1742_v9 = vpop.f32.mrb[6].mxu1  ;;  %v798_v10 = vpack.c.bf16 %v767_v5, %v766_v4 }
 0x1d8   :  { %v1743_v13 = vpop.f32.mrb[7].mxu1 }
 0x1d9   :  { %v648_v14 = vadd.f32 %v1741_v8, %v2425_v59  ;;  %v1744_v15 = vadd.f32 %v1743_v13, %v1742_v9  ;;  %1893 = vmatprep.mubr.bf16.mxu0 %v798_v10 }
 0x1db   :  { %v651_v16 = vadd.f32 %v1744_v15, %v2425_v59  ;;  %v768_v18 = vmax.f32 %v648_v14, 0.0 }
 0x1dd   :  { %v769_v19 = vmax.f32 %v651_v16, 0.0  ;;  %v1745_v20 = vpop.f32.mrb[8].mxu1 }
 0x1de   :  { %v1746_v21 = vpop.f32.mrb[9].mxu1 }
 0x1df   :  { %v799_v22 = vpack.c.bf16 %v769_v19, %v768_v18  ;;  %v1747_v23 = vadd.f32 %v1746_v21, %v1745_v20  ;;  %v1748_v24 = vpop.f32.mrb[10].mxu1 }
 0x1e0   :  { %v1749_v26 = vpop.f32.mrb[11].mxu1 }
 0x1e1   :  { %v656_v27 = vadd.f32 %v1747_v23, %v2425_v59  ;;  %v1750_v28 = vadd.f32 %v1749_v26, %v1748_v24  ;;  %1894 = vmatmul.mubr.bf16.vlgmr.msra.gmra.mrb[64].mxu0 %v799_v22 }
 0x1e2   :  { %1926 = vmatpush3.bf16.msra.mxu0 %v2026_v1 }
 0x1e3   :  { %v659_v29 = vadd.f32 %v1750_v28, %v2425_v59  ;;  %1927 = vmatprep.subr.bf16.mxu0 %v2027_v3  ;;  %v770_v31 = vmax.f32 %v656_v27, 0.0 }
 0x1e5   :  { %v771_v32 = vmax.f32 %v659_v29, 0.0  ;;  %v1751_v33 = vpop.f32.mrb[12].mxu1 }
 0x1e6   :  { %v1752_v34 = vpop.f32.mrb[13].mxu1  ;;  %1928 = vmatpush3.bf16.msra.mxu0 %v2027_v3 }
 0x1e7   :  { %v1753_v35 = vadd.f32 %v1752_v34, %v1751_v33  ;;  %v1754_v36 = vpop.f32.mrb[14].mxu1  ;;  %v800_v37 = vpack.c.bf16 %v771_v32, %v770_v31  ;;  %1929 = vmatprep.subr.bf16.mxu0 %v2028_v12 }
 0x1e8   :  { %v1755_v38 = vpop.f32.mrb[15].mxu1 }
 0x1e9   :  { %v664_v39 = vadd.f32 %v1753_v35, %v2425_v59  ;;  %v1756_v40 = vadd.f32 %v1755_v38, %v1754_v36  ;;  %1897 = vmatprep.mubr.bf16.mxu0 %v800_v37 }
 0x1ea   :  { %1930 = vmatpush3.bf16.msra.mxu0 %v2028_v12 }
 0x1eb   :  { %v667_v41 = vadd.f32 %v1756_v40, %v2425_v59  ;;  %1931 = vmatprep.subr.bf16.mxu0 %v2029_v17  ;;  %v772_v42 = vmax.f32 %v664_v39, 0.0 }
 0x1ed   :  { %v773_v43 = vmax.f32 %v667_v41, 0.0  ;;  %v1757_v44 = vpop.f32.mrb[16].mxu1 }
 0x1ee   :  { %v1758_v45 = vpop.f32.mrb[17].mxu1  ;;  %1932 = vmatpush3.bf16.msra.mxu0 %v2029_v17 }
 0x1ef   :  { %v1759_v46 = vadd.f32 %v1758_v45, %v1757_v44  ;;  %v1760_v47 = vpop.f32.mrb[18].mxu1  ;;  %v801_v48 = vpack.c.bf16 %v773_v43, %v772_v42  ;;  %1933 = vmatprep.subr.bf16.mxu0 %v2030_v25 }
 0x1f0   :  { %v1761_v49 = vpop.f32.mrb[19].mxu1 }
 0x1f1   :  { %v672_v50 = vadd.f32 %v1759_v46, %v2425_v59  ;;  %v1762_v51 = vadd.f32 %v1761_v49, %v1760_v47  ;;  %1898 = vmatmul.mubr.bf16.gmra.mrb[68].mxu0 %v801_v48 }
 0x1f2   :  { %1934 = vmatpush3.bf16.msra.mxu0 %v2030_v25 }
 0x1f3   :  { %v675_v52 = vadd.f32 %v1762_v51, %v2425_v59  ;;  %1935 = vmatprep.subr.bf16.mxu0 %v2031_v30  ;;  %v774_v53 = vmax.f32 %v672_v50, 0.0 }
 0x1f5   :  { %v775_v54 = vmax.f32 %v675_v52, 0.0  ;;  %v1763_v55 = vpop.f32.mrb[20].mxu1 }
 0x1f6   :  { %v1764_v56 = vpop.f32.mrb[21].mxu1  ;;  %1936 = vmatpush3.bf16.msra.mxu0 %v2031_v30 }
 0x1f7   :  { %v1765_v57 = vadd.f32 %v1764_v56, %v1763_v55  ;;  %v1766_v58 = vpop.f32.mrb[22].mxu1  ;;  %v802_v60 = vpack.c.bf16 %v775_v54, %v774_v53 }
 0x1f8   :  { %v1767_v0 = vpop.f32.mrb[23].mxu1 }
 0x1f9   :  { %v680_v61 = vadd.f32 %v1765_v57, %v2425_v59  ;;  %v1768_v62 = vadd.f32 %v1767_v0, %v1766_v58  ;;  %1901 = vmatprep.mubr.bf16.mxu0 %v802_v60 }
 0x1fb   :  { %v683_v11 = vadd.f32 %v1768_v62, %v2425_v59  ;;  %v776_v63 = vmax.f32 %v680_v61, 0.0 }
 0x1fd   :  { %v777_v1 = vmax.f32 %v683_v11, 0.0  ;;  %v1769_v2 = vpop.f32.mrb[24].mxu1 }
 0x1fe   :  { %v1770_v3 = vpop.f32.mrb[25].mxu1 }
 0x1ff   :  { %v1771_v4 = vadd.f32 %v1770_v3, %v1769_v2  ;;  %v1772_v5 = vpop.f32.mrb[26].mxu1  ;;  %v803_v6 = vpack.c.bf16 %v777_v1, %v776_v63 }
 0x200   :  { %v1773_v7 = vpop.f32.mrb[27].mxu1 }
 0x201   :  { %v688_v8 = vadd.f32 %v1771_v4, %v2425_v59  ;;  %v1774_v9 = vadd.f32 %v1773_v7, %v1772_v5  ;;  %1902 = vmatmul.mubr.bf16.gmra.mrb[72].mxu0 %v803_v6 }
 0x203   :  { %v691_v10 = vadd.f32 %v1774_v9, %v2425_v59  ;;  %v778_v12 = vmax.f32 %v688_v8, 0.0 }
 0x205   :  { %v779_v13 = vmax.f32 %v691_v10, 0.0  ;;  %v1775_v14 = vpop.f32.mrb[28].mxu1 }
 0x206   :  { %v1776_v15 = vpop.f32.mrb[29].mxu1 }
 0x207   :  { %v1777_v16 = vadd.f32 %v1776_v15, %v1775_v14  ;;  %v1778_v17 = vpop.f32.mrb[30].mxu1  ;;  %v804_v18 = vpack.c.bf16 %v779_v13, %v778_v12 }
 0x208   :  { %v1779_v19 = vpop.f32.mrb[31].mxu1 }
 0x209   :  { %v696_v20 = vadd.f32 %v1777_v16, %v2425_v59  ;;  %v1780_v21 = vadd.f32 %v1779_v19, %v1778_v17  ;;  %1905 = vmatprep.mubr.bf16.mxu0 %v804_v18  ;;  %v2032_v18 = vld [vmem:[%s2576_s7 + $0x30] sm:$0xff]  }
 0x20a   :  { %1937 = vmatprep.subr.bf16.mxu0 %v2032_v18  ;;  %1979 = vmatprep.subr.bf16.mxu1 %v2032_v18 }
 0x20b   :  { %v699_v22 = vadd.f32 %v1780_v21, %v2425_v59  ;;  %v780_v23 = vmax.f32 %v696_v20, 0.0  ;;  %1938 = vmatpush3.bf16.msra.mxu0 %v2032_v18  ;;  %1987 = vmatpush3.bf16.msra.mxu1 %v2032_v18 }
 0x20d   :  { %v781_v24 = vmax.f32 %v699_v22, 0.0  ;;  %v1781_v25 = vpop.f32.mrb[32].mxu1 }
 0x20e   :  { %v1782_v26 = vpop.f32.mrb[33].mxu1 }
 0x20f   :  { %v1783_v27 = vadd.f32 %v1782_v26, %v1781_v25  ;;  %v1784_v28 = vpop.f32.mrb[34].mxu1  ;;  %v805_v29 = vpack.c.bf16 %v781_v24, %v780_v23  ;;  %v2033_v26 = vld [vmem:[%s2576_s7 + $0x38] sm:$0xff]  }
 0x210   :  { %v1785_v30 = vpop.f32.mrb[35].mxu1  ;;  %1939 = vmatprep.subr.bf16.mxu0 %v2033_v26  ;;  %1980 = vmatprep.subr.bf16.mxu1 %v2033_v26 }
 0x211   :  { %v704_v31 = vadd.f32 %v1783_v27, %v2425_v59  ;;  %v1786_v32 = vadd.f32 %v1785_v30, %v1784_v28  ;;  %1906 = vmatmul.mubr.bf16.gmra.mrb[76].mxu0 %v805_v29  ;;  %1988 = vmatpush3.bf16.msra.mxu1 %v2033_v26 }
 0x212   :  { %1940 = vmatpush3.bf16.msra.mxu0 %v2033_v26 }
 0x213   :  { %v707_v33 = vadd.f32 %v1786_v32, %v2425_v59  ;;  %v782_v34 = vmax.f32 %v704_v31, 0.0 }
 0x215   :  { %v783_v35 = vmax.f32 %v707_v33, 0.0  ;;  %v1787_v36 = vpop.f32.mrb[36].mxu1 }
 0x216   :  { %v1788_v37 = vpop.f32.mrb[37].mxu1 }
 0x217   :  { %v1789_v38 = vadd.f32 %v1788_v37, %v1787_v36  ;;  %v1790_v39 = vpop.f32.mrb[38].mxu1  ;;  %v806_v40 = vpack.c.bf16 %v783_v35, %v782_v34 }
 0x218   :  { %v1791_v41 = vpop.f32.mrb[39].mxu1 }
 0x219   :  { %v712_v42 = vadd.f32 %v1789_v38, %v2425_v59  ;;  %v1792_v43 = vadd.f32 %v1791_v41, %v1790_v39  ;;  %1909 = vmatprep.mubr.bf16.mxu0 %v806_v40 }
 0x21b   :  { %v715_v44 = vadd.f32 %v1792_v43, %v2425_v59  ;;  %v784_v45 = vmax.f32 %v712_v42, 0.0 }
 0x21d   :  { %v785_v46 = vmax.f32 %v715_v44, 0.0  ;;  %v1793_v47 = vpop.f32.mrb[40].mxu1 }
 0x21e   :  { %v1794_v48 = vpop.f32.mrb[41].mxu1 }
 0x21f   :  { %v1795_v49 = vadd.f32 %v1794_v48, %v1793_v47  ;;  %v1796_v50 = vpop.f32.mrb[42].mxu1  ;;  %v807_v51 = vpack.c.bf16 %v785_v46, %v784_v45 }
 0x220   :  { %v1797_v52 = vpop.f32.mrb[43].mxu1 }
 0x221   :  { %v720_v53 = vadd.f32 %v1795_v49, %v2425_v59  ;;  %v1798_v54 = vadd.f32 %v1797_v52, %v1796_v50  ;;  %1910 = vmatmul.mubr.bf16.gmra.mrb[80].mxu0 %v807_v51 }
 0x223   :  { %v723_v55 = vadd.f32 %v1798_v54, %v2425_v59  ;;  %v786_v56 = vmax.f32 %v720_v53, 0.0  ;;  %v2486_v53 = vld [vmem:[%s2575_s6] ss:$0 sm:$0xff] }
 0x225   :  { %v787_v57 = vmax.f32 %v723_v55, 0.0  ;;  %v1799_v58 = vpop.f32.mrb[44].mxu1 }
 0x226   :  { %v1800_v60 = vpop.f32.mrb[45].mxu1 }
 0x227   :  { %v1801_v0 = vadd.f32 %v1800_v60, %v1799_v58  ;;  %v1802_v61 = vpop.f32.mrb[46].mxu1  ;;  %v808_v62 = vpack.c.bf16 %v787_v57, %v786_v56 }
 0x228   :  { %v1803_v11 = vpop.f32.mrb[47].mxu1 }
 0x229   :  { %v728_v63 = vadd.f32 %v1801_v0, %v2425_v59  ;;  %v1804_v1 = vadd.f32 %v1803_v11, %v1802_v61  ;;  %1913 = vmatprep.mubr.bf16.mxu0 %v808_v62 }
 0x22b   :  { %v731_v2 = vadd.f32 %v1804_v1, %v2425_v59  ;;  %v788_v3 = vmax.f32 %v728_v63, 0.0 }
 0x22d   :  { %v789_v4 = vmax.f32 %v731_v2, 0.0  ;;  %v1805_v5 = vpop.f32.mrb[48].mxu1 }
 0x22e   :  { %v1806_v6 = vpop.f32.mrb[49].mxu1 }
 0x22f   :  { %v1807_v7 = vadd.f32 %v1806_v6, %v1805_v5  ;;  %v1808_v8 = vpop.f32.mrb[50].mxu1  ;;  %v809_v9 = vpack.c.bf16 %v789_v4, %v788_v3 }
 0x230   :  { %v1809_v10 = vpop.f32.mrb[51].mxu1 }
 0x231   :  { %v736_v12 = vadd.f32 %v1807_v7, %v2425_v59  ;;  %v1810_v13 = vadd.f32 %v1809_v10, %v1808_v8  ;;  %1914 = vmatmul.mubr.bf16.gmra.mrb[84].mxu0 %v809_v9 }
 0x233   :  { %v739_v14 = vadd.f32 %v1810_v13, %v2425_v59  ;;  %v790_v15 = vmax.f32 %v736_v12, 0.0 }
 0x235   :  { %v791_v16 = vmax.f32 %v739_v14, 0.0  ;;  %v1811_v17 = vpop.f32.mrb[52].mxu1 }
 0x236   :  { %v1812_v19 = vpop.f32.mrb[53].mxu1 }
 0x237   :  { %v1813_v20 = vadd.f32 %v1812_v19, %v1811_v17  ;;  %v1814_v21 = vpop.f32.mrb[54].mxu1  ;;  %v810_v22 = vpack.c.bf16 %v791_v16, %v790_v15 }
 0x238   :  { %v1815_v23 = vpop.f32.mrb[55].mxu1 }
 0x239   :  { %v744_v24 = vadd.f32 %v1813_v20, %v2425_v59  ;;  %v1816_v25 = vadd.f32 %v1815_v23, %v1814_v21  ;;  %1917 = vmatprep.mubr.bf16.mxu0 %v810_v22 }
 0x23b   :  { %v747_v27 = vadd.f32 %v1816_v25, %v2425_v59  ;;  %v792_v28 = vmax.f32 %v744_v24, 0.0 }
 0x23d   :  { %v793_v29 = vmax.f32 %v747_v27, 0.0  ;;  %v1817_v30 = vpop.f32.mrb[56].mxu1 }
 0x23e   :  { %v1818_v31 = vpop.f32.mrb[57].mxu1 }
 0x23f   :  { %v1819_v32 = vadd.f32 %v1818_v31, %v1817_v30  ;;  %v1820_v33 = vpop.f32.mrb[58].mxu1  ;;  %v811_v34 = vpack.c.bf16 %v793_v29, %v792_v28 }
 0x240   :  { %v1821_v35 = vpop.f32.mrb[59].mxu1 }
 0x241   :  { %v752_v36 = vadd.f32 %v1819_v32, %v2425_v59  ;;  %v1822_v37 = vadd.f32 %v1821_v35, %v1820_v33  ;;  %1918 = vmatmul.mubr.bf16.gmra.mrb[88].mxu0 %v811_v34 }
 0x243   :  { %v755_v38 = vadd.f32 %v1822_v37, %v2425_v59  ;;  %v794_v39 = vmax.f32 %v752_v36, 0.0 }
 0x245   :  { %v795_v40 = vmax.f32 %v755_v38, 0.0  ;;  %v1823_v41 = vpop.f32.mrb[60].mxu1 }
 0x246   :  { %v1824_v42 = vpop.f32.mrb[61].mxu1 }
 0x247   :  { %v1825_v43 = vadd.f32 %v1824_v42, %v1823_v41  ;;  %v1826_v44 = vpop.f32.mrb[62].mxu1  ;;  %v812_v45 = vpack.c.bf16 %v795_v40, %v794_v39 }
 0x248   :  { %v1827_v46 = vpop.f32.mrb[63].mxu1 }
 0x249   :  { %v760_v47 = vadd.f32 %v1825_v43, %v2425_v59  ;;  %v1828_v48 = vadd.f32 %v1827_v46, %v1826_v44  ;;  %1921 = vmatprep.mubr.bf16.mxu0 %v812_v45 }
 0x24b   :  { %v763_v49 = vadd.f32 %v1828_v48, %v2425_v59  ;;  %v796_v50 = vmax.f32 %v760_v47, 0.0 }
 0x24d   :  { %v797_v51 = vmax.f32 %v763_v49, 0.0 }
 0x24f   :  { %v813_v52 = vpack.c.bf16 %v797_v51, %v796_v50 }
 0x251   :  { %1922 = vmatmul.mubr.bf16.gmra.mrb[92].mxu0 %v813_v52 }
 0x2b4   :  { %v1895_v54 = vpop.f32.mrb[64].mxu0 }
 0x2b5   :  { %v928_v55 = vadd.f32 %v1895_v54, %v2486_v53  ;;  %v919_v56 = vpop.f32.mrb[65].mxu0 }
 0x2b6   :  { %v920_v57 = vadd.f32 %v2486_v53, %v919_v56  ;;  %v1896_v58 = vpop.f32.mrb[66].mxu0 }
 0x2b7   :  { %v931_v60 = vadd.f32 %v1896_v58, %v2486_v53  ;;  %v922_v0 = vpop.f32.mrb[67].mxu0  ;;  %v1048_v61 = vmax.f32 %v928_v55, 0.0 }
 0x2b8   :  { %v923_v59 = vadd.f32 %v2486_v53, %v922_v0  ;;  %v1046_v11 = vmax.f32 %v920_v57, 0.0 }
 0x2b9   :  { %v1049_v62 = vmax.f32 %v931_v60, 0.0 }
 0x2ba   :  { %v1047_v63 = vmax.f32 %v923_v59, 0.0 }
 0x2bb   :  { %v1079_v1 = vpack.c.bf16 %v1049_v62, %v1048_v61 }
 0x2bc   :  { %v1078_v2 = vpack.c.bf16 %v1047_v63, %v1046_v11 }
 0x2be   :  { %1941 = vmatprep.mubr.bf16.mxu0 %v1078_v2 }
 0x2bf   :  { %1942 = vmatmul.mubr.bf16.vlgmr.msra.gmra.mrb[96].mxu0 %v1079_v1 }
 0x2c4   :  { %v1899_v3 = vpop.f32.mrb[68].mxu0 }
 0x2c5   :  { %v944_v4 = vadd.f32 %v1899_v3, %v2486_v53  ;;  %v935_v5 = vpop.f32.mrb[69].mxu0 }
 0x2c6   :  { %v936_v6 = vadd.f32 %v2486_v53, %v935_v5  ;;  %v1900_v7 = vpop.f32.mrb[70].mxu0 }
 0x2c7   :  { %v947_v8 = vadd.f32 %v1900_v7, %v2486_v53  ;;  %v938_v9 = vpop.f32.mrb[71].mxu0  ;;  %v1052_v12 = vmax.f32 %v944_v4, 0.0 }
 0x2c8   :  { %v939_v10 = vadd.f32 %v2486_v53, %v938_v9  ;;  %v1050_v14 = vmax.f32 %v936_v6, 0.0 }
 0x2c9   :  { %v1053_v13 = vmax.f32 %v947_v8, 0.0 }
 0x2ca   :  { %v1051_v15 = vmax.f32 %v939_v10, 0.0 }
 0x2cb   :  { %v1081_v16 = vpack.c.bf16 %v1053_v13, %v1052_v12 }
 0x2cc   :  { %v1080_v17 = vpack.c.bf16 %v1051_v15, %v1050_v14 }
 0x2ce   :  { %1945 = vmatprep.mubr.bf16.mxu1 %v1080_v17 }
 0x2cf   :  { %1946 = vmatmul.mubr.bf16.vlgmr.msra.gmra.mrb[64].mxu1 %v1081_v16 }
 0x2d4   :  { %v1903_v18 = vpop.f32.mrb[72].mxu0 }
 0x2d5   :  { %v960_v19 = vadd.f32 %v1903_v18, %v2486_v53  ;;  %v951_v20 = vpop.f32.mrb[73].mxu0 }
 0x2d6   :  { %v952_v21 = vadd.f32 %v2486_v53, %v951_v20  ;;  %v1904_v22 = vpop.f32.mrb[74].mxu0 }
 0x2d7   :  { %v963_v23 = vadd.f32 %v1904_v22, %v2486_v53  ;;  %v954_v24 = vpop.f32.mrb[75].mxu0  ;;  %v1056_v26 = vmax.f32 %v960_v19, 0.0 }
 0x2d8   :  { %v955_v25 = vadd.f32 %v2486_v53, %v954_v24  ;;  %v1054_v28 = vmax.f32 %v952_v21, 0.0 }
 0x2d9   :  { %v1057_v27 = vmax.f32 %v963_v23, 0.0 }
 0x2da   :  { %v1055_v29 = vmax.f32 %v955_v25, 0.0 }
 0x2db   :  { %v1083_v30 = vpack.c.bf16 %v1057_v27, %v1056_v26 }
 0x2dc   :  { %v1082_v31 = vpack.c.bf16 %v1055_v29, %v1054_v28 }
 0x2de   :  { %1949 = vmatprep.mubr.bf16.mxu1 %v1082_v31 }
 0x2df   :  { %1950 = vmatmul.mubr.bf16.gmra.mrb[68].mxu1 %v1083_v30 }
 0x2e4   :  { %v1907_v32 = vpop.f32.mrb[76].mxu0 }
 0x2e5   :  { %v976_v33 = vadd.f32 %v1907_v32, %v2486_v53  ;;  %v967_v34 = vpop.f32.mrb[77].mxu0 }
 0x2e6   :  { %v968_v35 = vadd.f32 %v2486_v53, %v967_v34  ;;  %v1908_v36 = vpop.f32.mrb[78].mxu0 }
 0x2e7   :  { %v979_v37 = vadd.f32 %v1908_v36, %v2486_v53  ;;  %v970_v38 = vpop.f32.mrb[79].mxu0  ;;  %v1060_v40 = vmax.f32 %v976_v33, 0.0 }
 0x2e8   :  { %v971_v39 = vadd.f32 %v2486_v53, %v970_v38  ;;  %v1058_v42 = vmax.f32 %v968_v35, 0.0 }
 0x2e9   :  { %v1061_v41 = vmax.f32 %v979_v37, 0.0 }
 0x2ea   :  { %v1059_v43 = vmax.f32 %v971_v39, 0.0 }
 0x2eb   :  { %v1085_v44 = vpack.c.bf16 %v1061_v41, %v1060_v40  ;;  %v2523_v40 = vld [vmem:[%s2577_s8] ss:$0 sm:$0xff] }
 0x2ec   :  { %v1084_v45 = vpack.c.bf16 %v1059_v43, %v1058_v42 }
 0x2ee   :  { %1953 = vmatprep.mubr.bf16.mxu1 %v1084_v45 }
 0x2ef   :  { %1954 = vmatmul.mubr.bf16.gmra.mrb[72].mxu1 %v1085_v44 }
 0x2f4   :  { %v1911_v46 = vpop.f32.mrb[80].mxu0 }
 0x2f5   :  { %v992_v47 = vadd.f32 %v1911_v46, %v2486_v53  ;;  %v983_v48 = vpop.f32.mrb[81].mxu0 }
 0x2f6   :  { %v984_v49 = vadd.f32 %v2486_v53, %v983_v48  ;;  %v1912_v50 = vpop.f32.mrb[82].mxu0 }
 0x2f7   :  { %v995_v51 = vadd.f32 %v1912_v50, %v2486_v53  ;;  %v986_v52 = vpop.f32.mrb[83].mxu0  ;;  %v1064_v55 = vmax.f32 %v992_v47, 0.0 }
 0x2f8   :  { %v987_v54 = vadd.f32 %v2486_v53, %v986_v52  ;;  %v1062_v57 = vmax.f32 %v984_v49, 0.0 }
 0x2f9   :  { %v1065_v56 = vmax.f32 %v995_v51, 0.0 }
 0x2fa   :  { %v1063_v58 = vmax.f32 %v987_v54, 0.0 }
 0x2fb   :  { %v1087_v60 = vpack.c.bf16 %v1065_v56, %v1064_v55 }
 0x2fc   :  { %v1086_v0 = vpack.c.bf16 %v1063_v58, %v1062_v57 }
 0x2fe   :  { %1957 = vmatprep.mubr.bf16.mxu1 %v1086_v0 }
 0x2ff   :  { %1958 = vmatmul.mubr.bf16.gmra.mrb[76].mxu1 %v1087_v60 }
 0x304   :  { %v1915_v59 = vpop.f32.mrb[84].mxu0 }
 0x305   :  { %v1008_v61 = vadd.f32 %v1915_v59, %v2486_v53  ;;  %v999_v62 = vpop.f32.mrb[85].mxu0 }
 0x306   :  { %v1000_v11 = vadd.f32 %v2486_v53, %v999_v62  ;;  %v1916_v63 = vpop.f32.mrb[86].mxu0 }
 0x307   :  { %v1011_v1 = vadd.f32 %v1916_v63, %v2486_v53  ;;  %v1002_v2 = vpop.f32.mrb[87].mxu0  ;;  %v1068_v4 = vmax.f32 %v1008_v61, 0.0 }
 0x308   :  { %v1003_v3 = vadd.f32 %v2486_v53, %v1002_v2  ;;  %v1066_v6 = vmax.f32 %v1000_v11, 0.0 }
 0x309   :  { %v1069_v5 = vmax.f32 %v1011_v1, 0.0 }
 0x30a   :  { %v1067_v7 = vmax.f32 %v1003_v3, 0.0 }
 0x30b   :  { %v1089_v8 = vpack.c.bf16 %v1069_v5, %v1068_v4 }
 0x30c   :  { %v1088_v9 = vpack.c.bf16 %v1067_v7, %v1066_v6 }
 0x30e   :  { %1961 = vmatprep.mubr.bf16.mxu1 %v1088_v9 }
 0x30f   :  { %1962 = vmatmul.mubr.bf16.gmra.mrb[80].mxu1 %v1089_v8 }
 0x314   :  { %v1919_v10 = vpop.f32.mrb[88].mxu0 }
 0x315   :  { %v1024_v12 = vadd.f32 %v1919_v10, %v2486_v53  ;;  %v1015_v13 = vpop.f32.mrb[89].mxu0 }
 0x316   :  { %v1016_v14 = vadd.f32 %v2486_v53, %v1015_v13  ;;  %v1920_v15 = vpop.f32.mrb[90].mxu0 }
 0x317   :  { %v1027_v16 = vadd.f32 %v1920_v15, %v2486_v53  ;;  %v1018_v17 = vpop.f32.mrb[91].mxu0  ;;  %v1072_v19 = vmax.f32 %v1024_v12, 0.0 }
 0x318   :  { %v1019_v18 = vadd.f32 %v2486_v53, %v1018_v17  ;;  %v1070_v21 = vmax.f32 %v1016_v14, 0.0 }
 0x319   :  { %v1073_v20 = vmax.f32 %v1027_v16, 0.0 }
 0x31a   :  { %v1071_v22 = vmax.f32 %v1019_v18, 0.0 }
 0x31b   :  { %v1091_v23 = vpack.c.bf16 %v1073_v20, %v1072_v19 }
 0x31c   :  { %v1090_v24 = vpack.c.bf16 %v1071_v22, %v1070_v21 }
 0x31e   :  { %1965 = vmatprep.mubr.bf16.mxu1 %v1090_v24 }
 0x31f   :  { %1966 = vmatmul.mubr.bf16.gmra.mrb[84].mxu1 %v1091_v23 }
 0x324   :  { %v1923_v25 = vpop.f32.mrb[92].mxu0 }
 0x325   :  { %v1040_v26 = vadd.f32 %v1923_v25, %v2486_v53  ;;  %v1031_v27 = vpop.f32.mrb[93].mxu0 }
 0x326   :  { %v1032_v28 = vadd.f32 %v2486_v53, %v1031_v27  ;;  %v1924_v29 = vpop.f32.mrb[94].mxu0 }
 0x327   :  { %v1043_v30 = vadd.f32 %v1924_v29, %v2486_v53  ;;  %v1034_v31 = vpop.f32.mrb[95].mxu0  ;;  %v1076_v33 = vmax.f32 %v1040_v26, 0.0 }
 0x328   :  { %v1035_v32 = vadd.f32 %v2486_v53, %v1034_v31  ;;  %v1074_v35 = vmax.f32 %v1032_v28, 0.0 }
 0x329   :  { %v1077_v34 = vmax.f32 %v1043_v30, 0.0 }
 0x32a   :  { %v1075_v36 = vmax.f32 %v1035_v32, 0.0 }
 0x32b   :  { %v1093_v37 = vpack.c.bf16 %v1077_v34, %v1076_v33 }
 0x32c   :  { %v1092_v38 = vpack.c.bf16 %v1075_v36, %v1074_v35 }
 0x32e   :  { %1969 = vmatprep.mubr.bf16.mxu1 %v1092_v38 }
 0x32f   :  { %1970 = vmatmul.mubr.bf16.gmra.mrb[88].mxu1 %v1093_v37 }
 0x392   :  { %v1943_v39 = vpop.f32.mrb[96].mxu0 }
 0x393   :  { %v1199_v41 = vpop.f32.mrb[97].mxu0  ;;  %v1208_v43 = vadd.f32 %v1943_v39, %v2523_v40 }
 0x394   :  { %v1944_v42 = vpop.f32.mrb[98].mxu0  ;;  %v1200_v45 = vadd.f32 %v2523_v40, %v1199_v41 }
 0x395   :  { %v1211_v53 = vadd.f32 %v1944_v42, %v2523_v40  ;;  %v1202_v44 = vpop.f32.mrb[99].mxu0 }
 0x396   :  { %v1203_v46 = vadd.f32 %v2523_v40, %v1202_v44 }
 0x397   :  { %v1630_v47 = vpack.c.bf16 %v1211_v53, %v1208_v43 }
 0x398   :  { %v1625_v48 = vpack.c.bf16 %v1203_v46, %v1200_v45 }
 0x399   :  { %1702 = vst [vmem:[#allocation5 + $0x8] sm:$0xff] %v1630_v47  }
 0x39a   :  { %1626 = vst [vmem:[#allocation5] sm:$0xff] %v1625_v48  }
 0x3a2   :  { %v1947_v49 = vpop.f32.mrb[64].mxu1 }
 0x3a3   :  { %v1215_v50 = vpop.f32.mrb[65].mxu1  ;;  %v1224_v52 = vadd.f32 %v1947_v49, %v2523_v40 }
 0x3a4   :  { %v1948_v51 = vpop.f32.mrb[66].mxu1  ;;  %v1216_v56 = vadd.f32 %v2523_v40, %v1215_v50 }
 0x3a5   :  { %v1227_v54 = vadd.f32 %v1948_v51, %v2523_v40  ;;  %v1218_v55 = vpop.f32.mrb[67].mxu1 }
 0x3a6   :  { %v1219_v57 = vadd.f32 %v2523_v40, %v1218_v55 }
 0x3a7   :  { %v1640_v58 = vpack.c.bf16 %v1227_v54, %v1224_v52 }
 0x3a8   :  { %v1635_v60 = vpack.c.bf16 %v1219_v57, %v1216_v56 }
 0x3a9   :  { %1704 = vst [vmem:[#allocation5 + $0x18] sm:$0xff] %v1640_v58  }
 0x3aa   :  { %1703 = vst [vmem:[#allocation5 + $0x10] sm:$0xff] %v1635_v60  }
 0x3b2   :  { %v1951_v0 = vpop.f32.mrb[68].mxu1 }
 0x3b3   :  { %v1231_v59 = vpop.f32.mrb[69].mxu1  ;;  %v1240_v62 = vadd.f32 %v1951_v0, %v2523_v40 }
 0x3b4   :  { %v1952_v61 = vpop.f32.mrb[70].mxu1  ;;  %v1232_v1 = vadd.f32 %v2523_v40, %v1231_v59 }
 0x3b5   :  { %v1243_v11 = vadd.f32 %v1952_v61, %v2523_v40  ;;  %v1234_v63 = vpop.f32.mrb[71].mxu1 }
 0x3b6   :  { %v1235_v2 = vadd.f32 %v2523_v40, %v1234_v63 }
 0x3b7   :  { %v1650_v3 = vpack.c.bf16 %v1243_v11, %v1240_v62 }
 0x3b8   :  { %v1645_v4 = vpack.c.bf16 %v1235_v2, %v1232_v1 }
 0x3b9   :  { %1706 = vst [vmem:[#allocation5 + $0x28] sm:$0xff] %v1650_v3  }
 0x3ba   :  { %1705 = vst [vmem:[#allocation5 + $0x20] sm:$0xff] %v1645_v4  }
 0x3c2   :  { %v1955_v5 = vpop.f32.mrb[72].mxu1 }
 0x3c3   :  { %v1247_v6 = vpop.f32.mrb[73].mxu1  ;;  %v1256_v8 = vadd.f32 %v1955_v5, %v2523_v40 }
 0x3c4   :  { %v1956_v7 = vpop.f32.mrb[74].mxu1  ;;  %v1248_v12 = vadd.f32 %v2523_v40, %v1247_v6 }
 0x3c5   :  { %v1259_v9 = vadd.f32 %v1956_v7, %v2523_v40  ;;  %v1250_v10 = vpop.f32.mrb[75].mxu1 }
 0x3c6   :  { %v1251_v13 = vadd.f32 %v2523_v40, %v1250_v10 }
 0x3c7   :  { %v1660_v14 = vpack.c.bf16 %v1259_v9, %v1256_v8 }
 0x3c8   :  { %v1655_v15 = vpack.c.bf16 %v1251_v13, %v1248_v12 }
 0x3c9   :  { %1708 = vst [vmem:[#allocation5 + $0x38] sm:$0xff] %v1660_v14  }
 0x3ca   :  { %1707 = vst [vmem:[#allocation5 + $0x30] sm:$0xff] %v1655_v15  }
 0x3d2   :  { %v1959_v16 = vpop.f32.mrb[76].mxu1 }
 0x3d3   :  { %v1263_v17 = vpop.f32.mrb[77].mxu1  ;;  %v1272_v19 = vadd.f32 %v1959_v16, %v2523_v40 }
 0x3d4   :  { %v1960_v18 = vpop.f32.mrb[78].mxu1  ;;  %v1264_v22 = vadd.f32 %v2523_v40, %v1263_v17 }
 0x3d5   :  { %v1275_v20 = vadd.f32 %v1960_v18, %v2523_v40  ;;  %v1266_v21 = vpop.f32.mrb[79].mxu1 }
 0x3d6   :  { %v1267_v23 = vadd.f32 %v2523_v40, %v1266_v21 }
 0x3d7   :  { %v1670_v24 = vpack.c.bf16 %v1275_v20, %v1272_v19 }
 0x3d8   :  { %v1665_v25 = vpack.c.bf16 %v1267_v23, %v1264_v22 }
 0x3d9   :  { %1710 = vst [vmem:[#allocation5 + $0x48] sm:$0xff] %v1670_v24  }
 0x3da   :  { %1709 = vst [vmem:[#allocation5 + $0x40] sm:$0xff] %v1665_v25  }
 0x3e2   :  { %v1963_v26 = vpop.f32.mrb[80].mxu1 }
 0x3e3   :  { %v1279_v27 = vpop.f32.mrb[81].mxu1  ;;  %v1288_v29 = vadd.f32 %v1963_v26, %v2523_v40 }
 0x3e4   :  { %v1964_v28 = vpop.f32.mrb[82].mxu1  ;;  %v1280_v32 = vadd.f32 %v2523_v40, %v1279_v27 }
 0x3e5   :  { %v1291_v30 = vadd.f32 %v1964_v28, %v2523_v40  ;;  %v1282_v31 = vpop.f32.mrb[83].mxu1 }
 0x3e6   :  { %v1283_v33 = vadd.f32 %v2523_v40, %v1282_v31 }
 0x3e7   :  { %v1680_v34 = vpack.c.bf16 %v1291_v30, %v1288_v29 }
 0x3e8   :  { %v1675_v35 = vpack.c.bf16 %v1283_v33, %v1280_v32 }
 0x3e9   :  { %1712 = vst [vmem:[#allocation5 + $0x58] sm:$0xff] %v1680_v34  }
 0x3ea   :  { %1711 = vst [vmem:[#allocation5 + $0x50] sm:$0xff] %v1675_v35  }
 0x3f2   :  { %v1967_v36 = vpop.f32.mrb[84].mxu1 }
 0x3f3   :  { %v1295_v37 = vpop.f32.mrb[85].mxu1  ;;  %v1304_v39 = vadd.f32 %v1967_v36, %v2523_v40 }
 0x3f4   :  { %v1968_v38 = vpop.f32.mrb[86].mxu1  ;;  %v1296_v43 = vadd.f32 %v2523_v40, %v1295_v37 }
 0x3f5   :  { %v1307_v41 = vadd.f32 %v1968_v38, %v2523_v40  ;;  %v1298_v42 = vpop.f32.mrb[87].mxu1 }
 0x3f6   :  { %v1299_v53 = vadd.f32 %v2523_v40, %v1298_v42 }
 0x3f7   :  { %v1690_v44 = vpack.c.bf16 %v1307_v41, %v1304_v39 }
 0x3f8   :  { %v1685_v45 = vpack.c.bf16 %v1299_v53, %v1296_v43 }
 0x3f9   :  { %1714 = vst [vmem:[#allocation5 + $0x68] sm:$0xff] %v1690_v44  }
 0x3fa   :  { %1713 = vst [vmem:[#allocation5 + $0x60] sm:$0xff] %v1685_v45  }
 0x402   :  { %v1971_v46 = vpop.f32.mrb[88].mxu1 }
 0x403   :  { %v1311_v47 = vpop.f32.mrb[89].mxu1  ;;  %v1320_v49 = vadd.f32 %v1971_v46, %v2523_v40 }
 0x404   :  { %v1972_v48 = vpop.f32.mrb[90].mxu1  ;;  %v1312_v52 = vadd.f32 %v2523_v40, %v1311_v47 }
 0x405   :  { %v1323_v50 = vadd.f32 %v1972_v48, %v2523_v40  ;;  %v1314_v51 = vpop.f32.mrb[91].mxu1 }
 0x406   :  { %v1315_v54 = vadd.f32 %v2523_v40, %v1314_v51 }
 0x407   :  { %v1700_v55 = vpack.c.bf16 %v1323_v50, %v1320_v49 }
 0x408   :  { %v1695_v56 = vpack.c.bf16 %v1315_v54, %v1312_v52 }
 0x409   :  { %1716 = vst [vmem:[#allocation5 + $0x78] sm:$0xff] %v1700_v55  }
 0x40a   :  { %1715 = vst [vmem:[#allocation5 + $0x70] sm:$0xff] %v1695_v56  }
 0x40b   :  { %1490 = vsyncadd [#allocation4], 448  ;;  %s2086_s8 = smov [#allocation5]  }
 0x40c   :  { %s1491_s17 = sshll.u32 %s2086_s8, 4  ;;  %s1492_s17 = int_to_ptr.vmem [resolvable:$true] %s1491_s17 }
 0x40d   :  { %s2056_s18 = scalar_lea.vmem %s1492_s17, 1600  ;;  %s2060_s19 = scalar_lea.vmem %s1492_s17, 2048 }
 0x40e   :  { %p2057_p8 = scmp.ne.s32.totalorder %s1492_s17, %s2056_s18  ;;  %p2061_p9 = scmp.lt.s32.totalorder %s1492_s17, %s1492_s17 }
 0x40f   :  { %p2062_p10 = scmp.lt.s32.totalorder %s2060_s19, %s2056_s18 }
 0x411   :  { %p2063_p11 = por %p2062_p10, %p2061_p9 }
 0x413   :  { %p2064_p12 = pnand %p2063_p11, %p2057_p8 }
 0x415   :  { %2067 = shalt.err (!%p2064_p12)
}
 0x416   :  { %s2068_s22 = scalar_lea.hbm %s2578_s9, 1600 }
 0x417   :  { %p2069_p13 = scmp.ne.s32.totalorder %s2578_s9, %s2068_s22  ;;  %p2072_p0 = scmp.lt.u32.totalorder %s2068_s22, %s2578_s9 }
 0x419   :  { %p2074_p1 = pnand %p2072_p0, %p2069_p13 }
 0x41b   :  { %2077 = shalt.err (!%p2074_p1)
}
 0x41c   :  { %s2087_s25 = smov 64   ;;  %s2088_s26 = smov 4  }
 0x41d   :  { %1497 = dma.vmem_to_hbm [thread:$0]  %s1492_s17, 1600, %s2578_s9, [#allocation4], %s2087_s25, %s2087_s25, %s2088_s26  }
 0x41e   :  { %2080 = dma.done.wait [#allocation4], 2048  }
 0x41f   :  { %2081 = vsyncadd [#allocation4], 4294965248 }
 0x420   :  { %1501 = vsyncpa [#allocation3], 1 }
 0x421   :  { %1502 = vsyncpa [#allocation4], 1 }

</bundles_post_ra>
